<compile_context>
chip_gen: v7x
topology: tpu7x:2x2x1
jax: 0.10.0
libtpu: 0.0.40
codegen_flags: <defaults>
</compile_context>

<pallas_src>
import jax
import jax.numpy as jnp
from jax import lax
from jax.experimental import pallas as pl
from jax.experimental.pallas import tpu as pltpu


def rrcnn_kernel(x_ref, w1_ref, b1_ref, ma_ref, ta_ref, mb_ref, tb_ref,
                 out_ref, pad_ref):
    H = x_ref.shape[1]          # block is (1, H, W*Cin)
    WC = out_ref.shape[2]       # W*Cout (lane dim)

    # Keep the 1-row zero borders of the persistent padded scratch valid.
    # Re-zeroing every grid step keeps correctness independent of which core
    # ran step 0 under megacore sharding; it is 2 rows -> trivial.
    zrow = jnp.zeros((1, WC), jnp.float32)
    pad_ref[0:1, :] = zrow
    pad_ref[H + 1:H + 2, :] = zrow

    # ---- 1x1 conv (block-diagonal matmul on the MXU) + bias ----
    x0 = (jnp.dot(x_ref[0], w1_ref[...], preferred_element_type=jnp.float32)
          + b1_ref[...])                                   # (H, W*Cout)

    def conv_bn_relu(feat, m_ref, t_ref):
        # 3x3 "same" conv as 3 band-matrix matmuls (one per ky tap).  The
        # W-direction zero padding is baked into the band matrices; the
        # H-direction padding comes from the zero border rows of pad_ref.
        pad_ref[1:H + 1, :] = feat
        acc = jnp.dot(pad_ref[0:H, :], m_ref[0],
                      preferred_element_type=jnp.float32)
        acc = acc + jnp.dot(pad_ref[1:H + 1, :], m_ref[1],
                            preferred_element_type=jnp.float32)
        acc = acc + jnp.dot(pad_ref[2:H + 2, :], m_ref[2],
                            preferred_element_type=jnp.float32)
        # conv bias + BatchNorm (eval) folded: scale already in m, shift t.
        return jnp.maximum(acc + t_ref[...], 0.0)

    def recurrent_block(base, m_ref, t_ref):
        # t = 2  =>  three applications of the shared conv
        x1 = conv_bn_relu(base, m_ref, t_ref)
        x1 = conv_bn_relu(base + x1, m_ref, t_ref)
        x1 = conv_bn_relu(base + x1, m_ref, t_ref)
        return x1

    x1 = recurrent_block(x0, ma_ref, ta_ref)
    x2 = recurrent_block(x1, mb_ref, tb_ref)
    out_ref[0] = x0 + x2        # single lane-dense store of the output block


def build_band_mats(w, s, W):
    """Fold BN scale into the HWIO (3,3,Cin,Cout) weights and build, for each
    ky, the (W*Cin, W*Cout) block-banded matrix holding its 3 kx taps."""
    Cout = w.shape[3]
    wf = (w * s.reshape(1, 1, 1, Cout)).astype(jnp.float32)
    mats = []
    for ky in range(3):
        m = None
        for kx in range(3):
            dx = kx - 1
            # E[x_in, x_out] = 1  iff  x_in = x_out + dx
            e = jnp.eye(W, k=-dx, dtype=jnp.float32)
            blk = jnp.kron(e, wf[ky, kx])
            m = blk if m is None else m + blk
        mats.append(m)
    return jnp.stack(mats)      # (3, W*Cin, W*Cout)


def rrcnn_forward(x, params):
    N, H, W, Cin = x.shape
    Cout = params["w1"].shape[1]
    WCin, WCout = W * Cin, W * Cout

    # Host-side weight prep (all static-shape, tiny).
    w1_big = jnp.kron(jnp.eye(W, dtype=jnp.float32),
                      params["w1"].astype(jnp.float32))        # (W*Cin, W*Cout)
    b1_t = jnp.tile(params["b1"].reshape(Cout), W).reshape(1, WCout)
    ma = build_band_mats(params["wa"], params["sa"], W)
    ta_t = jnp.tile(params["ta"].reshape(Cout), W).reshape(1, WCout)
    mb = build_band_mats(params["wb"], params["sb"], W)
    tb_t = jnp.tile(params["tb"].reshape(Cout), W).reshape(1, WCout)

    # Minor-dim merge only (row-major) -> cheap relabel, no transpose.
    x2d = x.reshape(N, H, WCin)

    def whole(a):
        nd = a.ndim
        return pl.BlockSpec(a.shape, lambda n, _nd=nd: (0,) * _nd)

    grid_spec = pltpu.PrefetchScalarGridSpec(
        num_scalar_prefetch=0,
        grid=(N,),
        in_specs=[
            pl.BlockSpec((1, H, WCin), lambda n: (n, 0, 0)),
            whole(w1_big), whole(b1_t),
            whole(ma), whole(ta_t),
            whole(mb), whole(tb_t),
        ],
        out_specs=pl.BlockSpec((1, H, WCout), lambda n: (n, 0, 0)),
        scratch_shapes=[pltpu.VMEM((H + 2, WCout), jnp.float32)],
    )

    out2d = pl.pallas_call(
        rrcnn_kernel,
        out_shape=jax.ShapeDtypeStruct((N, H, WCout), jnp.float32),
        grid_spec=grid_spec,
        compiler_params=pltpu.CompilerParams(
            dimension_semantics=("parallel",),
            vmem_limit_bytes=32 * 1024 * 1024),
    )(x2d, w1_big, b1_t, ma, ta_t, mb, tb_t)
    return out2d.reshape(N, H, W, Cout)


# ---------------- deterministic parameter construction ----------------
def make_params(key, ch_in, ch_out):
    ks = jax.random.split(key, 20)
    eps = 1e-5

    def bn_fold(bias, gamma, beta, mean, var):
        s = gamma / jnp.sqrt(var + eps)
        t = (bias - mean) * s + beta
        return s.reshape(1, ch_out), t.reshape(1, ch_out)

    # Conv_1x1: torch weight (ch_out, ch_in, 1, 1) -> stored as (ch_in, ch_out)
    w1 = 0.3 * jax.random.normal(ks[0], (ch_in, ch_out), jnp.float32)
    b1 = 0.1 * jax.random.normal(ks[1], (1, ch_out), jnp.float32)

    def rec_block_params(koff):
        # Conv2d(ch_out, ch_out, 3): torch (O,I,3,3) -> stored HWIO (3,3,I,O)
        w = 0.1 * jax.random.normal(ks[koff + 0], (3, 3, ch_out, ch_out), jnp.float32)
        b = 0.1 * jax.random.normal(ks[koff + 1], (ch_out,), jnp.float32)
        gamma = 1.0 + 0.1 * jax.random.normal(ks[koff + 2], (ch_out,), jnp.float32)
        beta = 0.1 * jax.random.normal(ks[koff + 3], (ch_out,), jnp.float32)
        mean = 0.1 * jax.random.normal(ks[koff + 4], (ch_out,), jnp.float32)
        var = jax.random.uniform(ks[koff + 5], (ch_out,), jnp.float32, 0.5, 1.5)
        s, t = bn_fold(b, gamma, beta, mean, var)
        return w, s, t

    wa, sa, ta = rec_block_params(2)
    wb, sb, tb = rec_block_params(8)
    return dict(w1=w1, b1=b1, wa=wa, sa=sa, ta=ta, wb=wb, sb=sb, tb=tb)


# ---------------- pure-JAX reference (correctness check) ----------------
def ref_forward(x, p):
    dn = ("NHWC", "HWIO", "NHWC")
    Cin, Cout = p["w1"].shape

    x0 = lax.conv_general_dilated(
        x, p["w1"].reshape(1, 1, Cin, Cout), (1, 1), "VALID",
        dimension_numbers=dn) + p["b1"].reshape(Cout)

    def cbr(f, w, s, t):
        y = lax.conv_general_dilated(f, w, (1, 1), "SAME", dimension_numbers=dn)
        return jnp.maximum(y * s.reshape(Cout) + t.reshape(Cout), 0.0)

    def rec(base, w, s, t):
        x1 = cbr(base, w, s, t)
        x1 = cbr(base + x1, w, s, t)
        x1 = cbr(base + x1, w, s, t)
        return x1

    x1 = rec(x0, p["wa"], p["sa"], p["ta"])
    x2 = rec(x1, p["wb"], p["sb"], p["tb"])
    return x0 + x2


if __name__ == "__main__":
    key = jax.random.PRNGKey(0)
    kx, kp = jax.random.split(key)

    N, H, W = 2, 16, 16
    ch_in, ch_out = 4, 8

    # NHWC input (equivalent to torch NCHW (2, 4, 16, 16))
    x = jax.random.normal(kx, (N, H, W, ch_in), jnp.float32)
    params = make_params(kp, ch_in, ch_out)

    out = rrcnn_forward(x, params)
    out = jax.block_until_ready(out)

    ref = ref_forward(x, params)
    assert out.shape == (N, H, W, ch_out)
    assert jnp.allclose(out, ref, atol=2e-3, rtol=2e-3), (
        f"max abs err {float(jnp.max(jnp.abs(out - ref)))}")

    print("KERNEL_OK")
</pallas_src>

<mosaic_0001>
module attributes {stable_mosaic.version = 11 : i64} {
  func.func @rrcnn_kernel(%arg0: i32, %arg1: memref<1x16x64xf32, #tpu.memory_space<vmem>>, %arg2: memref<64x128xf32, #tpu.memory_space<vmem>>, %arg3: memref<1x128xf32, #tpu.memory_space<vmem>>, %arg4: memref<3x128x128xf32, #tpu.memory_space<vmem>>, %arg5: memref<1x128xf32, #tpu.memory_space<vmem>>, %arg6: memref<3x128x128xf32, #tpu.memory_space<vmem>>, %arg7: memref<1x128xf32, #tpu.memory_space<vmem>>, %arg8: memref<1x16x128xf32, #tpu.memory_space<vmem>>, %arg9: memref<18x128xf32, #tpu.memory_space<vmem>>) attributes {dimension_semantics = [#tpu.dimension_semantics<parallel>], iteration_bounds = array<i64: 2>, scalar_prefetch = 0 : i64, scratch_operands = 1 : i64, tpu.core_type = #tpu.core_type<tc>, window_params = [{transform_indices = @transform_0, window_bounds = array<i64: 1, 16, 64>}, {pipeline_mode = #tpu.pipeline_mode<synchronous>, transform_indices = @transform_1, window_bounds = array<i64: 64, 128>}, {pipeline_mode = #tpu.pipeline_mode<synchronous>, transform_indices = @transform_2, window_bounds = array<i64: 1, 128>}, {pipeline_mode = #tpu.pipeline_mode<synchronous>, transform_indices = @transform_3, window_bounds = array<i64: 3, 128, 128>}, {pipeline_mode = #tpu.pipeline_mode<synchronous>, transform_indices = @transform_4, window_bounds = array<i64: 1, 128>}, {pipeline_mode = #tpu.pipeline_mode<synchronous>, transform_indices = @transform_5, window_bounds = array<i64: 3, 128, 128>}, {pipeline_mode = #tpu.pipeline_mode<synchronous>, transform_indices = @transform_6, window_bounds = array<i64: 1, 128>}, {transform_indices = @transform_7, window_bounds = array<i64: 1, 16, 128>}]} {
    %cst = arith.constant 0.000000e+00 : f32
    %0 = vector.broadcast %cst : f32 to vector<1x128xf32>
    %c0 = arith.constant 0 : index
    %c0_0 = arith.constant 0 : index
    %1 = vector.load %arg9[%c0, %c0_0] : memref<18x128xf32, #tpu.memory_space<vmem>>, vector<1x128xf32>
    tpu.vector_store %arg9[%c0, %c0_0], %0 {strides = array<i32>} : memref<18x128xf32, #tpu.memory_space<vmem>>, vector<1x128xf32>,
    %c17 = arith.constant 17 : index
    %c0_1 = arith.constant 0 : index
    %2 = vector.load %arg9[%c17, %c0_1] : memref<18x128xf32, #tpu.memory_space<vmem>>, vector<1x128xf32>
    tpu.vector_store %arg9[%c17, %c0_1], %0 {strides = array<i32>} : memref<18x128xf32, #tpu.memory_space<vmem>>, vector<1x128xf32>,
    %c0_2 = arith.constant 0 : index
    %c0_3 = arith.constant 0 : index
    %c0_4 = arith.constant 0 : index
    %3 = vector.load %arg1[%c0_2, %c0_3, %c0_4] : memref<1x16x64xf32, #tpu.memory_space<vmem>>, vector<1x16x64xf32>
    %4 = vector.shape_cast %3 : vector<1x16x64xf32> to vector<16x64xf32>
    %c0_5 = arith.constant 0 : index
    %c0_6 = arith.constant 0 : index
    %5 = vector.load %arg2[%c0_5, %c0_6] : memref<64x128xf32, #tpu.memory_space<vmem>>, vector<64x128xf32>
    %cst_7 = arith.constant dense<0.000000e+00> : vector<16x128xf32>
    %6 = tpu.matmul %4, %5, %cst_7 {dimension_numbers = #tpu.dot_dimension_numbers<[1], [0], [0], [1], [0, 0, 1, 1], [], []>} : vector<16x64xf32>, vector<64x128xf32>, vector<16x128xf32> -> vector<16x128xf32>
    %c0_8 = arith.constant 0 : index
    %c0_9 = arith.constant 0 : index
    %7 = vector.load %arg3[%c0_8, %c0_9] : memref<1x128xf32, #tpu.memory_space<vmem>>, vector<1x128xf32>
    %8 = vector.broadcast %7 : vector<1x128xf32> to vector<16x128xf32>
    %9 = arith.addf %6, %8 : vector<16x128xf32>
    %c1 = arith.constant 1 : index
    %c0_10 = arith.constant 0 : index
    %10 = vector.load %arg9[%c1, %c0_10] : memref<18x128xf32, #tpu.memory_space<vmem>>, vector<16x128xf32>
    tpu.vector_store %arg9[%c1, %c0_10], %9 {strides = array<i32>} : memref<18x128xf32, #tpu.memory_space<vmem>>, vector<16x128xf32>,
    %c0_11 = arith.constant 0 : index
    %c0_12 = arith.constant 0 : index
    %11 = vector.load %arg9[%c0_11, %c0_12] : memref<18x128xf32, #tpu.memory_space<vmem>>, vector<16x128xf32>
    %c0_13 = arith.constant 0 : index
    %c0_14 = arith.constant 0 : index
    %c0_15 = arith.constant 0 : index
    %12 = vector.load %arg4[%c0_13, %c0_14, %c0_15] : memref<3x128x128xf32, #tpu.memory_space<vmem>>, vector<1x128x128xf32>
    %13 = vector.shape_cast %12 : vector<1x128x128xf32> to vector<128x128xf32>
    %cst_16 = arith.constant dense<0.000000e+00> : vector<16x128xf32>
    %14 = tpu.matmul %11, %13, %cst_16 {dimension_numbers = #tpu.dot_dimension_numbers<[1], [0], [0], [1], [0, 0, 1, 1], [], []>} : vector<16x128xf32>, vector<128x128xf32>, vector<16x128xf32> -> vector<16x128xf32>
    %c1_17 = arith.constant 1 : index
    %c0_18 = arith.constant 0 : index
    %15 = vector.load %arg9[%c1_17, %c0_18] : memref<18x128xf32, #tpu.memory_space<vmem>>, vector<16x128xf32>
    %c1_19 = arith.constant 1 : index
    %c0_20 = arith.constant 0 : index
    %c0_21 = arith.constant 0 : index
    %16 = vector.load %arg4[%c1_19, %c0_20, %c0_21] : memref<3x128x128xf32, #tpu.memory_space<vmem>>, vector<1x128x128xf32>
    %17 = vector.shape_cast %16 : vector<1x128x128xf32> to vector<128x128xf32>
    %cst_22 = arith.constant dense<0.000000e+00> : vector<16x128xf32>
    %18 = tpu.matmul %15, %17, %cst_22 {dimension_numbers = #tpu.dot_dimension_numbers<[1], [0], [0], [1], [0, 0, 1, 1], [], []>} : vector<16x128xf32>, vector<128x128xf32>, vector<16x128xf32> -> vector<16x128xf32>
    %19 = arith.addf %14, %18 : vector<16x128xf32>
    %c2 = arith.constant 2 : index
    %c0_23 = arith.constant 0 : index
    %20 = vector.load %arg9[%c2, %c0_23] : memref<18x128xf32, #tpu.memory_space<vmem>>, vector<16x128xf32>
    %c2_24 = arith.constant 2 : index
    %c0_25 = arith.constant 0 : index
    %c0_26 = arith.constant 0 : index
    %21 = vector.load %arg4[%c2_24, %c0_25, %c0_26] : memref<3x128x128xf32, #tpu.memory_space<vmem>>, vector<1x128x128xf32>
    %22 = vector.shape_cast %21 : vector<1x128x128xf32> to vector<128x128xf32>
    %cst_27 = arith.constant dense<0.000000e+00> : vector<16x128xf32>
    %23 = tpu.matmul %20, %22, %cst_27 {dimension_numbers = #tpu.dot_dimension_numbers<[1], [0], [0], [1], [0, 0, 1, 1], [], []>} : vector<16x128xf32>, vector<128x128xf32>, vector<16x128xf32> -> vector<16x128xf32>
    %24 = arith.addf %19, %23 : vector<16x128xf32>
    %c0_28 = arith.constant 0 : index
    %c0_29 = arith.constant 0 : index
    %25 = vector.load %arg5[%c0_28, %c0_29] : memref<1x128xf32, #tpu.memory_space<vmem>>, vector<1x128xf32>
    %26 = vector.broadcast %25 : vector<1x128xf32> to vector<16x128xf32>
    %27 = arith.addf %24, %26 : vector<16x128xf32>
    %cst_30 = arith.constant 0.000000e+00 : f32
    %28 = vector.broadcast %cst_30 : f32 to vector<16x128xf32>
    %29 = arith.maximumf %27, %28 : vector<16x128xf32>
    %30 = arith.addf %9, %29 : vector<16x128xf32>
    %c1_31 = arith.constant 1 : index
    %c0_32 = arith.constant 0 : index
    %31 = vector.load %arg9[%c1_31, %c0_32] : memref<18x128xf32, #tpu.memory_space<vmem>>, vector<16x128xf32>
    tpu.vector_store %arg9[%c1_31, %c0_32], %30 {strides = array<i32>} : memref<18x128xf32, #tpu.memory_space<vmem>>, vector<16x128xf32>,
    %c0_33 = arith.constant 0 : index
    %c0_34 = arith.constant 0 : index
    %32 = vector.load %arg9[%c0_33, %c0_34] : memref<18x128xf32, #tpu.memory_space<vmem>>, vector<16x128xf32>
    %c0_35 = arith.constant 0 : index
    %c0_36 = arith.constant 0 : index
    %c0_37 = arith.constant 0 : index
    %33 = vector.load %arg4[%c0_35, %c0_36, %c0_37] : memref<3x128x128xf32, #tpu.memory_space<vmem>>, vector<1x128x128xf32>
    %34 = vector.shape_cast %33 : vector<1x128x128xf32> to vector<128x128xf32>
    %cst_38 = arith.constant dense<0.000000e+00> : vector<16x128xf32>
    %35 = tpu.matmul %32, %34, %cst_38 {dimension_numbers = #tpu.dot_dimension_numbers<[1], [0], [0], [1], [0, 0, 1, 1], [], []>} : vector<16x128xf32>, vector<128x128xf32>, vector<16x128xf32> -> vector<16x128xf32>
    %c1_39 = arith.constant 1 : index
    %c0_40 = arith.constant 0 : index
    %36 = vector.load %arg9[%c1_39, %c0_40] : memref<18x128xf32, #tpu.memory_space<vmem>>, vector<16x128xf32>
    %c1_41 = arith.constant 1 : index
    %c0_42 = arith.constant 0 : index
    %c0_43 = arith.constant 0 : index
    %37 = vector.load %arg4[%c1_41, %c0_42, %c0_43] : memref<3x128x128xf32, #tpu.memory_space<vmem>>, vector<1x128x128xf32>
    %38 = vector.shape_cast %37 : vector<1x128x128xf32> to vector<128x128xf32>
    %cst_44 = arith.constant dense<0.000000e+00> : vector<16x128xf32>
    %39 = tpu.matmul %36, %38, %cst_44 {dimension_numbers = #tpu.dot_dimension_numbers<[1], [0], [0], [1], [0, 0, 1, 1], [], []>} : vector<16x128xf32>, vector<128x128xf32>, vector<16x128xf32> -> vector<16x128xf32>
    %40 = arith.addf %35, %39 : vector<16x128xf32>
    %c2_45 = arith.constant 2 : index
    %c0_46 = arith.constant 0 : index
    %41 = vector.load %arg9[%c2_45, %c0_46] : memref<18x128xf32, #tpu.memory_space<vmem>>, vector<16x128xf32>
    %c2_47 = arith.constant 2 : index
    %c0_48 = arith.constant 0 : index
    %c0_49 = arith.constant 0 : index
    %42 = vector.load %arg4[%c2_47, %c0_48, %c0_49] : memref<3x128x128xf32, #tpu.memory_space<vmem>>, vector<1x128x128xf32>
    %43 = vector.shape_cast %42 : vector<1x128x128xf32> to vector<128x128xf32>
    %cst_50 = arith.constant dense<0.000000e+00> : vector<16x128xf32>
    %44 = tpu.matmul %41, %43, %cst_50 {dimension_numbers = #tpu.dot_dimension_numbers<[1], [0], [0], [1], [0, 0, 1, 1], [], []>} : vector<16x128xf32>, vector<128x128xf32>, vector<16x128xf32> -> vector<16x128xf32>
    %45 = arith.addf %40, %44 : vector<16x128xf32>
    %c0_51 = arith.constant 0 : index
    %c0_52 = arith.constant 0 : index
    %46 = vector.load %arg5[%c0_51, %c0_52] : memref<1x128xf32, #tpu.memory_space<vmem>>, vector<1x128xf32>
    %47 = vector.broadcast %46 : vector<1x128xf32> to vector<16x128xf32>
    %48 = arith.addf %45, %47 : vector<16x128xf32>
    %cst_53 = arith.constant 0.000000e+00 : f32
    %49 = vector.broadcast %cst_53 : f32 to vector<16x128xf32>
    %50 = arith.maximumf %48, %49 : vector<16x128xf32>
    %51 = arith.addf %9, %50 : vector<16x128xf32>
    %c1_54 = arith.constant 1 : index
    %c0_55 = arith.constant 0 : index
    %52 = vector.load %arg9[%c1_54, %c0_55] : memref<18x128xf32, #tpu.memory_space<vmem>>, vector<16x128xf32>
    tpu.vector_store %arg9[%c1_54, %c0_55], %51 {strides = array<i32>} : memref<18x128xf32, #tpu.memory_space<vmem>>, vector<16x128xf32>,
    %c0_56 = arith.constant 0 : index
    %c0_57 = arith.constant 0 : index
    %53 = vector.load %arg9[%c0_56, %c0_57] : memref<18x128xf32, #tpu.memory_space<vmem>>, vector<16x128xf32>
    %c0_58 = arith.constant 0 : index
    %c0_59 = arith.constant 0 : index
    %c0_60 = arith.constant 0 : index
    %54 = vector.load %arg4[%c0_58, %c0_59, %c0_60] : memref<3x128x128xf32, #tpu.memory_space<vmem>>, vector<1x128x128xf32>
    %55 = vector.shape_cast %54 : vector<1x128x128xf32> to vector<128x128xf32>
    %cst_61 = arith.constant dense<0.000000e+00> : vector<16x128xf32>
    %56 = tpu.matmul %53, %55, %cst_61 {dimension_numbers = #tpu.dot_dimension_numbers<[1], [0], [0], [1], [0, 0, 1, 1], [], []>} : vector<16x128xf32>, vector<128x128xf32>, vector<16x128xf32> -> vector<16x128xf32>
    %c1_62 = arith.constant 1 : index
    %c0_63 = arith.constant 0 : index
    %57 = vector.load %arg9[%c1_62, %c0_63] : memref<18x128xf32, #tpu.memory_space<vmem>>, vector<16x128xf32>
    %c1_64 = arith.constant 1 : index
    %c0_65 = arith.constant 0 : index
    %c0_66 = arith.constant 0 : index
    %58 = vector.load %arg4[%c1_64, %c0_65, %c0_66] : memref<3x128x128xf32, #tpu.memory_space<vmem>>, vector<1x128x128xf32>
    %59 = vector.shape_cast %58 : vector<1x128x128xf32> to vector<128x128xf32>
    %cst_67 = arith.constant dense<0.000000e+00> : vector<16x128xf32>
    %60 = tpu.matmul %57, %59, %cst_67 {dimension_numbers = #tpu.dot_dimension_numbers<[1], [0], [0], [1], [0, 0, 1, 1], [], []>} : vector<16x128xf32>, vector<128x128xf32>, vector<16x128xf32> -> vector<16x128xf32>
    %61 = arith.addf %56, %60 : vector<16x128xf32>
    %c2_68 = arith.constant 2 : index
    %c0_69 = arith.constant 0 : index
    %62 = vector.load %arg9[%c2_68, %c0_69] : memref<18x128xf32, #tpu.memory_space<vmem>>, vector<16x128xf32>
    %c2_70 = arith.constant 2 : index
    %c0_71 = arith.constant 0 : index
    %c0_72 = arith.constant 0 : index
    %63 = vector.load %arg4[%c2_70, %c0_71, %c0_72] : memref<3x128x128xf32, #tpu.memory_space<vmem>>, vector<1x128x128xf32>
    %64 = vector.shape_cast %63 : vector<1x128x128xf32> to vector<128x128xf32>
    %cst_73 = arith.constant dense<0.000000e+00> : vector<16x128xf32>
    %65 = tpu.matmul %62, %64, %cst_73 {dimension_numbers = #tpu.dot_dimension_numbers<[1], [0], [0], [1], [0, 0, 1, 1], [], []>} : vector<16x128xf32>, vector<128x128xf32>, vector<16x128xf32> -> vector<16x128xf32>
    %66 = arith.addf %61, %65 : vector<16x128xf32>
    %c0_74 = arith.constant 0 : index
    %c0_75 = arith.constant 0 : index
    %67 = vector.load %arg5[%c0_74, %c0_75] : memref<1x128xf32, #tpu.memory_space<vmem>>, vector<1x128xf32>
    %68 = vector.broadcast %67 : vector<1x128xf32> to vector<16x128xf32>
    %69 = arith.addf %66, %68 : vector<16x128xf32>
    %cst_76 = arith.constant 0.000000e+00 : f32
    %70 = vector.broadcast %cst_76 : f32 to vector<16x128xf32>
    %71 = arith.maximumf %69, %70 : vector<16x128xf32>
    %c1_77 = arith.constant 1 : index
    %c0_78 = arith.constant 0 : index
    %72 = vector.load %arg9[%c1_77, %c0_78] : memref<18x128xf32, #tpu.memory_space<vmem>>, vector<16x128xf32>
    tpu.vector_store %arg9[%c1_77, %c0_78], %71 {strides = array<i32>} : memref<18x128xf32, #tpu.memory_space<vmem>>, vector<16x128xf32>,
    %c0_79 = arith.constant 0 : index
    %c0_80 = arith.constant 0 : index
    %73 = vector.load %arg9[%c0_79, %c0_80] : memref<18x128xf32, #tpu.memory_space<vmem>>, vector<16x128xf32>
    %c0_81 = arith.constant 0 : index
    %c0_82 = arith.constant 0 : index
    %c0_83 = arith.constant 0 : index
    %74 = vector.load %arg6[%c0_81, %c0_82, %c0_83] : memref<3x128x128xf32, #tpu.memory_space<vmem>>, vector<1x128x128xf32>
    %75 = vector.shape_cast %74 : vector<1x128x128xf32> to vector<128x128xf32>
    %cst_84 = arith.constant dense<0.000000e+00> : vector<16x128xf32>
    %76 = tpu.matmul %73, %75, %cst_84 {dimension_numbers = #tpu.dot_dimension_numbers<[1], [0], [0], [1], [0, 0, 1, 1], [], []>} : vector<16x128xf32>, vector<128x128xf32>, vector<16x128xf32> -> vector<16x128xf32>
    %c1_85 = arith.constant 1 : index
    %c0_86 = arith.constant 0 : index
    %77 = vector.load %arg9[%c1_85, %c0_86] : memref<18x128xf32, #tpu.memory_space<vmem>>, vector<16x128xf32>
    %c1_87 = arith.constant 1 : index
    %c0_88 = arith.constant 0 : index
    %c0_89 = arith.constant 0 : index
    %78 = vector.load %arg6[%c1_87, %c0_88, %c0_89] : memref<3x128x128xf32, #tpu.memory_space<vmem>>, vector<1x128x128xf32>
    %79 = vector.shape_cast %78 : vector<1x128x128xf32> to vector<128x128xf32>
    %cst_90 = arith.constant dense<0.000000e+00> : vector<16x128xf32>
    %80 = tpu.matmul %77, %79, %cst_90 {dimension_numbers = #tpu.dot_dimension_numbers<[1], [0], [0], [1], [0, 0, 1, 1], [], []>} : vector<16x128xf32>, vector<128x128xf32>, vector<16x128xf32> -> vector<16x128xf32>
    %81 = arith.addf %76, %80 : vector<16x128xf32>
    %c2_91 = arith.constant 2 : index
    %c0_92 = arith.constant 0 : index
    %82 = vector.load %arg9[%c2_91, %c0_92] : memref<18x128xf32, #tpu.memory_space<vmem>>, vector<16x128xf32>
    %c2_93 = arith.constant 2 : index
    %c0_94 = arith.constant 0 : index
    %c0_95 = arith.constant 0 : index
    %83 = vector.load %arg6[%c2_93, %c0_94, %c0_95] : memref<3x128x128xf32, #tpu.memory_space<vmem>>, vector<1x128x128xf32>
    %84 = vector.shape_cast %83 : vector<1x128x128xf32> to vector<128x128xf32>
    %cst_96 = arith.constant dense<0.000000e+00> : vector<16x128xf32>
    %85 = tpu.matmul %82, %84, %cst_96 {dimension_numbers = #tpu.dot_dimension_numbers<[1], [0], [0], [1], [0, 0, 1, 1], [], []>} : vector<16x128xf32>, vector<128x128xf32>, vector<16x128xf32> -> vector<16x128xf32>
    %86 = arith.addf %81, %85 : vector<16x128xf32>
    %c0_97 = arith.constant 0 : index
    %c0_98 = arith.constant 0 : index
    %87 = vector.load %arg7[%c0_97, %c0_98] : memref<1x128xf32, #tpu.memory_space<vmem>>, vector<1x128xf32>
    %88 = vector.broadcast %87 : vector<1x128xf32> to vector<16x128xf32>
    %89 = arith.addf %86, %88 : vector<16x128xf32>
    %cst_99 = arith.constant 0.000000e+00 : f32
    %90 = vector.broadcast %cst_99 : f32 to vector<16x128xf32>
    %91 = arith.maximumf %89, %90 : vector<16x128xf32>
    %92 = arith.addf %71, %91 : vector<16x128xf32>
    %c1_100 = arith.constant 1 : index
    %c0_101 = arith.constant 0 : index
    %93 = vector.load %arg9[%c1_100, %c0_101] : memref<18x128xf32, #tpu.memory_space<vmem>>, vector<16x128xf32>
    tpu.vector_store %arg9[%c1_100, %c0_101], %92 {strides = array<i32>} : memref<18x128xf32, #tpu.memory_space<vmem>>, vector<16x128xf32>,
    %c0_102 = arith.constant 0 : index
    %c0_103 = arith.constant 0 : index
    %94 = vector.load %arg9[%c0_102, %c0_103] : memref<18x128xf32, #tpu.memory_space<vmem>>, vector<16x128xf32>
    %c0_104 = arith.constant 0 : index
    %c0_105 = arith.constant 0 : index
    %c0_106 = arith.constant 0 : index
    %95 = vector.load %arg6[%c0_104, %c0_105, %c0_106] : memref<3x128x128xf32, #tpu.memory_space<vmem>>, vector<1x128x128xf32>
    %96 = vector.shape_cast %95 : vector<1x128x128xf32> to vector<128x128xf32>
    %cst_107 = arith.constant dense<0.000000e+00> : vector<16x128xf32>
    %97 = tpu.matmul %94, %96, %cst_107 {dimension_numbers = #tpu.dot_dimension_numbers<[1], [0], [0], [1], [0, 0, 1, 1], [], []>} : vector<16x128xf32>, vector<128x128xf32>, vector<16x128xf32> -> vector<16x128xf32>
    %c1_108 = arith.constant 1 : index
    %c0_109 = arith.constant 0 : index
    %98 = vector.load %arg9[%c1_108, %c0_109] : memref<18x128xf32, #tpu.memory_space<vmem>>, vector<16x128xf32>
    %c1_110 = arith.constant 1 : index
    %c0_111 = arith.constant 0 : index
    %c0_112 = arith.constant 0 : index
    %99 = vector.load %arg6[%c1_110, %c0_111, %c0_112] : memref<3x128x128xf32, #tpu.memory_space<vmem>>, vector<1x128x128xf32>
    %100 = vector.shape_cast %99 : vector<1x128x128xf32> to vector<128x128xf32>
    %cst_113 = arith.constant dense<0.000000e+00> : vector<16x128xf32>
    %101 = tpu.matmul %98, %100, %cst_113 {dimension_numbers = #tpu.dot_dimension_numbers<[1], [0], [0], [1], [0, 0, 1, 1], [], []>} : vector<16x128xf32>, vector<128x128xf32>, vector<16x128xf32> -> vector<16x128xf32>
    %102 = arith.addf %97, %101 : vector<16x128xf32>
    %c2_114 = arith.constant 2 : index
    %c0_115 = arith.constant 0 : index
    %103 = vector.load %arg9[%c2_114, %c0_115] : memref<18x128xf32, #tpu.memory_space<vmem>>, vector<16x128xf32>
    %c2_116 = arith.constant 2 : index
    %c0_117 = arith.constant 0 : index
    %c0_118 = arith.constant 0 : index
    %104 = vector.load %arg6[%c2_116, %c0_117, %c0_118] : memref<3x128x128xf32, #tpu.memory_space<vmem>>, vector<1x128x128xf32>
    %105 = vector.shape_cast %104 : vector<1x128x128xf32> to vector<128x128xf32>
    %cst_119 = arith.constant dense<0.000000e+00> : vector<16x128xf32>
    %106 = tpu.matmul %103, %105, %cst_119 {dimension_numbers = #tpu.dot_dimension_numbers<[1], [0], [0], [1], [0, 0, 1, 1], [], []>} : vector<16x128xf32>, vector<128x128xf32>, vector<16x128xf32> -> vector<16x128xf32>
    %107 = arith.addf %102, %106 : vector<16x128xf32>
    %c0_120 = arith.constant 0 : index
    %c0_121 = arith.constant 0 : index
    %108 = vector.load %arg7[%c0_120, %c0_121] : memref<1x128xf32, #tpu.memory_space<vmem>>, vector<1x128xf32>
    %109 = vector.broadcast %108 : vector<1x128xf32> to vector<16x128xf32>
    %110 = arith.addf %107, %109 : vector<16x128xf32>
    %cst_122 = arith.constant 0.000000e+00 : f32
    %111 = vector.broadcast %cst_122 : f32 to vector<16x128xf32>
    %112 = arith.maximumf %110, %111 : vector<16x128xf32>
    %113 = arith.addf %71, %112 : vector<16x128xf32>
    %c1_123 = arith.constant 1 : index
    %c0_124 = arith.constant 0 : index
    %114 = vector.load %arg9[%c1_123, %c0_124] : memref<18x128xf32, #tpu.memory_space<vmem>>, vector<16x128xf32>
    tpu.vector_store %arg9[%c1_123, %c0_124], %113 {strides = array<i32>} : memref<18x128xf32, #tpu.memory_space<vmem>>, vector<16x128xf32>,
    %c0_125 = arith.constant 0 : index
    %c0_126 = arith.constant 0 : index
    %115 = vector.load %arg9[%c0_125, %c0_126] : memref<18x128xf32, #tpu.memory_space<vmem>>, vector<16x128xf32>
    %c0_127 = arith.constant 0 : index
    %c0_128 = arith.constant 0 : index
    %c0_129 = arith.constant 0 : index
    %116 = vector.load %arg6[%c0_127, %c0_128, %c0_129] : memref<3x128x128xf32, #tpu.memory_space<vmem>>, vector<1x128x128xf32>
    %117 = vector.shape_cast %116 : vector<1x128x128xf32> to vector<128x128xf32>
    %cst_130 = arith.constant dense<0.000000e+00> : vector<16x128xf32>
    %118 = tpu.matmul %115, %117, %cst_130 {dimension_numbers = #tpu.dot_dimension_numbers<[1], [0], [0], [1], [0, 0, 1, 1], [], []>} : vector<16x128xf32>, vector<128x128xf32>, vector<16x128xf32> -> vector<16x128xf32>
    %c1_131 = arith.constant 1 : index
    %c0_132 = arith.constant 0 : index
    %119 = vector.load %arg9[%c1_131, %c0_132] : memref<18x128xf32, #tpu.memory_space<vmem>>, vector<16x128xf32>
    %c1_133 = arith.constant 1 : index
    %c0_134 = arith.constant 0 : index
    %c0_135 = arith.constant 0 : index
    %120 = vector.load %arg6[%c1_133, %c0_134, %c0_135] : memref<3x128x128xf32, #tpu.memory_space<vmem>>, vector<1x128x128xf32>
    %121 = vector.shape_cast %120 : vector<1x128x128xf32> to vector<128x128xf32>
    %cst_136 = arith.constant dense<0.000000e+00> : vector<16x128xf32>
    %122 = tpu.matmul %119, %121, %cst_136 {dimension_numbers = #tpu.dot_dimension_numbers<[1], [0], [0], [1], [0, 0, 1, 1], [], []>} : vector<16x128xf32>, vector<128x128xf32>, vector<16x128xf32> -> vector<16x128xf32>
    %123 = arith.addf %118, %122 : vector<16x128xf32>
    %c2_137 = arith.constant 2 : index
    %c0_138 = arith.constant 0 : index
    %124 = vector.load %arg9[%c2_137, %c0_138] : memref<18x128xf32, #tpu.memory_space<vmem>>, vector<16x128xf32>
    %c2_139 = arith.constant 2 : index
    %c0_140 = arith.constant 0 : index
    %c0_141 = arith.constant 0 : index
    %125 = vector.load %arg6[%c2_139, %c0_140, %c0_141] : memref<3x128x128xf32, #tpu.memory_space<vmem>>, vector<1x128x128xf32>
    %126 = vector.shape_cast %125 : vector<1x128x128xf32> to vector<128x128xf32>
    %cst_142 = arith.constant dense<0.000000e+00> : vector<16x128xf32>
    %127 = tpu.matmul %124, %126, %cst_142 {dimension_numbers = #tpu.dot_dimension_numbers<[1], [0], [0], [1], [0, 0, 1, 1], [], []>} : vector<16x128xf32>, vector<128x128xf32>, vector<16x128xf32> -> vector<16x128xf32>
    %128 = arith.addf %123, %127 : vector<16x128xf32>
    %c0_143 = arith.constant 0 : index
    %c0_144 = arith.constant 0 : index
    %129 = vector.load %arg7[%c0_143, %c0_144] : memref<1x128xf32, #tpu.memory_space<vmem>>, vector<1x128xf32>
    %130 = vector.broadcast %129 : vector<1x128xf32> to vector<16x128xf32>
    %131 = arith.addf %128, %130 : vector<16x128xf32>
    %cst_145 = arith.constant 0.000000e+00 : f32
    %132 = vector.broadcast %cst_145 : f32 to vector<16x128xf32>
    %133 = arith.maximumf %131, %132 : vector<16x128xf32>
    %134 = arith.addf %9, %133 : vector<16x128xf32>
    %c0_146 = arith.constant 0 : index
    %c0_147 = arith.constant 0 : index
    %c0_148 = arith.constant 0 : index
    %135 = vector.load %arg8[%c0_146, %c0_147, %c0_148] : memref<1x16x128xf32, #tpu.memory_space<vmem>>, vector<1x16x128xf32>
    %136 = vector.shape_cast %135 : vector<1x16x128xf32> to vector<16x128xf32>
    %137 = vector.shape_cast %134 : vector<16x128xf32> to vector<1x16x128xf32>
    tpu.vector_store %arg8[%c0_146, %c0_147, %c0_148], %137 {strides = array<i32>} : memref<1x16x128xf32, #tpu.memory_space<vmem>>, vector<1x16x128xf32>,
    return
  }
  func.func @transform_0(%arg0: i32) -> (i32, i32, i32) {
    %c0_i32 = arith.constant 0 : i32
    %c0_i32_0 = arith.constant 0 : i32
    %c0_i32_1 = arith.constant 0 : i32
    return %arg0, %c0_i32, %c0_i32_0 : i32, i32, i32
  }
  func.func @transform_1(%arg0: i32) -> (i32, i32) {
    %c0_i32 = arith.constant 0 : i32
    %c0_i32_0 = arith.constant 0 : i32
    %c0_i32_1 = arith.constant 0 : i32
    return %c0_i32, %c0_i32_0 : i32, i32
  }
  func.func @transform_2(%arg0: i32) -> (i32, i32) {
    %c0_i32 = arith.constant 0 : i32
    %c0_i32_0 = arith.constant 0 : i32
    %c0_i32_1 = arith.constant 0 : i32
    return %c0_i32, %c0_i32_0 : i32, i32
  }
  func.func @transform_3(%arg0: i32) -> (i32, i32, i32) {
    %c0_i32 = arith.constant 0 : i32
    %c0_i32_0 = arith.constant 0 : i32
    %c0_i32_1 = arith.constant 0 : i32
    %c0_i32_2 = arith.constant 0 : i32
    return %c0_i32, %c0_i32_0, %c0_i32_1 : i32, i32, i32
  }
  func.func @transform_4(%arg0: i32) -> (i32, i32) {
    %c0_i32 = arith.constant 0 : i32
    %c0_i32_0 = arith.constant 0 : i32
    %c0_i32_1 = arith.constant 0 : i32
    return %c0_i32, %c0_i32_0 : i32, i32
  }
  func.func @transform_5(%arg0: i32) -> (i32, i32, i32) {
    %c0_i32 = arith.constant 0 : i32
    %c0_i32_0 = arith.constant 0 : i32
    %c0_i32_1 = arith.constant 0 : i32
    %c0_i32_2 = arith.constant 0 : i32
    return %c0_i32, %c0_i32_0, %c0_i32_1 : i32, i32, i32
  }
  func.func @transform_6(%arg0: i32) -> (i32, i32) {
    %c0_i32 = arith.constant 0 : i32
    %c0_i32_0 = arith.constant 0 : i32
    %c0_i32_1 = arith.constant 0 : i32
    return %c0_i32, %c0_i32_0 : i32, i32
  }
  func.func @transform_7(%arg0: i32) -> (i32, i32, i32) {
    %c0_i32 = arith.constant 0 : i32
    %c0_i32_0 = arith.constant 0 : i32
    %c0_i32_1 = arith.constant 0 : i32
    return %arg0, %c0_i32, %c0_i32_0 : i32, i32, i32
  }
}

</mosaic_0001>

<bundles_post_ra>
// kernel: tpu_custom_call.1
= control target key start
LH: loop header
LB: loop body
LE: loop exit
PB: predicated region body
PF: predicated region fallthrough
CT: control target
= control target key end

     0   :  { %12 = vsyncpa [#allocation4], 0  ;;  %s5006_s0 = inlined_call_operand.hbm [shape: f32[2,16,64], index: 0, kind: input, shape index: {}]   ;;  %s5007_s1 = inlined_call_operand.hbm [shape: f32[64,128], index: 1, kind: input, shape index: {}]   ;;  %s5008_s2 = inlined_call_operand.vmem [shape: f32[1,128], index: 2, kind: input, shape index: {}]   ;;  %s5009_s3 = inlined_call_operand.hbm [shape: f32[3,128,128], index: 3, kind: input, shape index: {}]   ;;  %s5010_s4 = inlined_call_operand.vmem [shape: f32[1,128], index: 4, kind: input, shape index: {}]   ;;  %s5011_s5 = inlined_call_operand.hbm [shape: f32[3,128,128], index: 5, kind: input, shape index: {}]   ;;  %s5012_s6 = inlined_call_operand.vmem [shape: f32[1,128], index: 6, kind: input, shape index: {}]   ;;  %s5013_s7 = inlined_call_operand.hbm [shape: f32[2,16,128], index: 7, kind: output, shape index: {}]  }
   0x1   :  { %14 = vsyncpa [#allocation4 + $0x1], 0 }
   0x2   :  { %15 = vsyncpa [#allocation7], 0 }
   0x3   :  { %16 = vsyncpa [#allocation10], 0 }
   0x4   :  { %17 = vsyncpa [#allocation5], 0 }
   0x5   :  { %19 = vsyncpa [#allocation5 + $0x1], 0  ;;  %s4290_s24 = smov 0   ;;  %s4292_s25 = smov 0  }
   0x6   :  { %s4294_s26 = smov 0   ;;  %s4296_s27 = smov 0  }
   0x7 LB: > { %s4311_s28 = sadd.s32 4294967295, %s4238_s27   ;;  %s2338_s29 = sadd.s32 4294967294, %s4238_s27   ;;  %s4238_s27 = sphi %s4296_s27, %s5039_s27   ;;  %s4234_s26 = sphi %s4294_s26, %s5038_s26   ;;  %s4230_s25 = sphi %s4292_s25, %s5037_s25   ;;  %s4226_s24 = sphi %s4290_s24, %s5036_s24  }
   0x8   : > { %p45_p0 = scmp.ne.s32.totalorder %s4230_s25, %s4226_s24  ;;  %p5014_p1 = scmp.eq.s32.totalorder %s4311_s28, 0 }
   0x9   : > { %p201_p3 = scmp.eq.s32.totalorder %s2338_s29, 1  ;;  %p2339_p5 = scmp.ge.s32.totalorder %s4238_s27, 1 }
   0xa   : > { %p4320_p4 = por %p5014_p1, %p45_p0  ;;  %p208_p7 = scmp.lt.s32.totalorder %s4238_s27, 3 }
   0xb   : > { %p4325_p6 = por %p201_p3, %p45_p0  ;;  %s4240_s10 = smov [#allocation6]  }
   0xc   : > { %s5018_s30 = scalar_select %p4320_p4, 1, 0 }
   0xd   : > { %s5019_s8 = scalar_select %p4325_p6, 1, 0 }
   0xe   : > { %p4330_p8 = pnand %p2339_p5, %p208_p7  ;;  %s220_s11 = sshll.u32 %s4240_s10, 4  ;;  %s4334_s11 = int_to_ptr.vmem [resolvable:$true] %s220_s11 }
   0xf   : > { %5020 = sst [smem:[#allocation16_spill]] %s5019_s8  ;;  %s4241_s13 = smov [#allocation8]  }
  0x10   : > { %s5021_s9 = scalar_select %p4330_p8, 1, 0 }
  0x11   : > { %p3984_p9 = pneg %p4330_p8  ;;  %s236_s14 = sshll.u32 %s4241_s13, 4  ;;  %s4345_s14 = int_to_ptr.vmem [resolvable:$true] %s236_s14 }
  0x12   : > { %s4242_s15 = smov [#allocation9]   ;;  %s4050_s19 = scalar_lea.hbm %s5007_s1, 1024 }
  0x13   : > { %p4341_p11 = pnand %p3984_p9, %p5014_p1  ;;  %s4347_s16 = sshll.u32 %s4242_s15, 4  ;;  %s253_s16 = int_to_ptr.vmem [resolvable:$true] %s4347_s16 }
  0x14   : > { %p4051_p12 = scmp.ne.s32.totalorder %s5007_s1, %s4050_s19  ;;  %p4057_p5 = scmp.lt.u32.totalorder %s4050_s19, %s5007_s1 }
  0x15   : > { %p4357_p13 = pneg %p4341_p11 }
  0x17   : > { %p4053_p0 = pnand %p4357_p13, %p4051_p12 }
  0x19   : > { %p4054_p3 = pneg %p4053_p0 }
  0x1b   : > { %p4059_p7 = pnand %p4057_p5, %p4054_p3 }
  0x1d   : > { %4062 = shalt.err (!%p4059_p7)
}
  0x1e   : > { %s4063_s10 = scalar_lea.vmem %s4334_s11, 1024  ;;  %p4071_p2 = scmp.lt.s32.totalorder %s4334_s11, %s4334_s11 }
  0x1f   : > { %p4064_p9 = scmp.ne.s32.totalorder %s4334_s11, %s4063_s10  ;;  %p4072_p6 = scmp.lt.s32.totalorder %s4063_s10, %s4063_s10 }
  0x21   : > { %p4066_p10 = pnand %p4064_p9, %p4357_p13  ;;  %p4073_p12 = por %p4072_p6, %p4071_p2 }
  0x23   : > { %p4067_p1 = pneg %p4066_p10 }
  0x25   : > { %p4074_p0 = pnand %p4073_p12, %p4067_p1 }
  0x27   : > { %4077 = shalt.err (!%p4074_p0)
}
  0x28   : > { %s4243_s13 = smov 128   ;;  %s4244_s15 = smov 8  }
  0x29   : > { %3987 = dma.hbm_to_vmem [thread:$0]  (!%p4341_p11), %s5007_s1, 1024, %s4334_s11, [#allocation7], %s4243_s13, %s4243_s13, %s4244_s15  }
  0x2a   : > { %s4078_s21 = scalar_lea.hbm %s5009_s3, 6144 }
  0x2b   : > { %p4079_p1 = scmp.ne.s32.totalorder %s5009_s3, %s4078_s21  ;;  %p4085_p10 = scmp.lt.u32.totalorder %s4078_s21, %s5009_s3 }
  0x2d   : > { %p4081_p2 = pnand %p4079_p1, %p4357_p13 }
  0x2f   : > { %p4082_p6 = pneg %p4081_p2 }
  0x31   : > { %p4087_p3 = pnand %p4085_p10, %p4082_p6 }
  0x33   : > { %4090 = shalt.err (!%p4087_p3)
}
  0x34   : > { %s4091_s11 = scalar_lea.vmem %s4345_s14, 6144  ;;  %p4099_p12 = scmp.lt.s32.totalorder %s4345_s14, %s4345_s14 }
  0x35   : > { %p4092_p5 = scmp.ne.s32.totalorder %s4345_s14, %s4091_s11  ;;  %p4100_p0 = scmp.lt.s32.totalorder %s4091_s11, %s4091_s11 }
  0x37   : > { %p4094_p7 = pnand %p4092_p5, %p4357_p13  ;;  %p4101_p1 = por %p4100_p0, %p4099_p12 }
  0x39   : > { %p4095_p9 = pneg %p4094_p7 }
  0x3b   : > { %p4102_p2 = pnand %p4101_p1, %p4095_p9 }
  0x3d   : > { %4105 = shalt.err (!%p4102_p2)
}
  0x3e   : > { %3990 = dma.hbm_to_vmem [thread:$0]  (!%p4341_p11), %s5009_s3, 6144, %s4345_s14, [#allocation7], %s4243_s13, %s4243_s13, %s4244_s15  }
  0x3f   : > { %s4106_s20 = scalar_lea.hbm %s5011_s5, 6144 }
  0x40   : > { %p4107_p6 = scmp.ne.s32.totalorder %s5011_s5, %s4106_s20  ;;  %p4113_p5 = scmp.lt.u32.totalorder %s4106_s20, %s5011_s5 }
  0x42   : > { %p4109_p10 = pnand %p4107_p6, %p4357_p13 }
  0x44   : > { %p4110_p3 = pneg %p4109_p10 }
  0x46   : > { %p4115_p7 = pnand %p4113_p5, %p4110_p3 }
  0x48   : > { %4118 = shalt.err (!%p4115_p7)
}
  0x49   : > { %s4119_s11 = scalar_lea.vmem %s253_s16, 6144  ;;  %p4127_p1 = scmp.lt.s32.totalorder %s253_s16, %s253_s16 }
  0x4a   : > { %p4120_p9 = scmp.ne.s32.totalorder %s253_s16, %s4119_s11  ;;  %p4128_p2 = scmp.lt.s32.totalorder %s4119_s11, %s4119_s11 }
  0x4c   : > { %p4122_p12 = pnand %p4120_p9, %p4357_p13  ;;  %p4129_p4 = por %p4128_p2, %p4127_p1 }
  0x4e   : > { %p4123_p0 = pneg %p4122_p12 }
  0x50   : > { %p4130_p8 = pnand %p4129_p4, %p4123_p0 }
  0x52   : > { %4133 = shalt.err (!%p4130_p8)
}
  0x53   : > { %3993 = dma.hbm_to_vmem [thread:$0]  (!%p4341_p11), %s5011_s5, 6144, %s253_s16, [#allocation10], %s4243_s13, %s4243_s13, %s4244_s15  }
  0x54   : > { %s4430_s22 = sadd.s32 1, %s4238_s27   ;;  %s32_s17 = sadd.s32 1, %s4234_s26 }
  0x55   : > { %s29_s12 = ssub.s32 %s4238_s27, %s4430_s22  ;;  %p39_p8 = scmp.ne.s32.totalorder %s4234_s26, %s4230_s25 }
  0x56   : > { %p30_p4 = scmp.eq.s32.totalorder %s29_s12, 0  ;;  %p40_p13 = scmp.eq.s32.totalorder %s4238_s27, 0 }
  0x57   : > { %p4005_p6 = scmp.lt.s32.totalorder %s4238_s27, 2  ;;  %p5024_p3 = scmp.eq.s32.totalorder %s4311_s28, 1 }
  0x58   : > { %s4440_s18 = scalar_select %p30_p4, %s4234_s26, %s32_s17  }
  0x59   : > { %p41_p10 = por %p40_p13, %p39_p8  ;;  %p4444_p5 = por %p5024_p3, %p39_p8 }
  0x5a   : > { %s269_s20 = sand.u32 1, %s4234_s26   ;;  %s2367_s21 = sshll.u32 %s4238_s27, 8 }
  0x5b   : > { %s2344_s16 = sshll.u32 %s269_s20, 4  ;;  %s4453_s10 = scalar_lea.hbm %s5006_s0, %s2367_s21 }
  0x5c   : > { %s273_s11 = scalar_lea.vmem [#allocation3], %s2344_s16  ;;  %p4455_p11 = pnand %p4005_p6, %p41_p10 }
  0x5d   : > { %s280_s14 = sshll.u32 %s273_s11, 4  ;;  %s4461_s12 = scalar_lea.sflag [#allocation4], %s269_s20  ;;  %s4459_s14 = int_to_ptr.vmem [resolvable:$true] %s280_s14 }
  0x5e   : > { %s4134_s17 = scalar_lea.hbm %s4453_s10, 256  ;;  %p4136_p9 = pneg %p4455_p11 }
  0x5f   : > { %p4135_p7 = scmp.ne.s32.totalorder %s4453_s10, %s4134_s17  ;;  %s4139_s23 = scalar_lea.hbm %s5006_s0, 512 }
  0x60   : > { %p4140_p1 = scmp.lt.u32.totalorder %s4453_s10, %s5006_s0  ;;  %p4141_p2 = scmp.lt.u32.totalorder %s4139_s23, %s4134_s17 }
  0x61   : > { %p4137_p12 = pnand %p4136_p9, %p4135_p7  ;;  %p4143_p8 = scmp.lt.u32.totalorder %s4134_s17, %s4453_s10 }
  0x62   : > { %p4142_p4 = por %p4141_p2, %p4140_p1 }
  0x63   : > { %p4138_p0 = pneg %p4137_p12 }
  0x64   : > { %p4144_p13 = por %p4143_p8, %p4142_p4 }
  0x66   : > { %p4145_p6 = pnand %p4144_p13, %p4138_p0 }
  0x68   : > { %4148 = shalt.err (!%p4145_p6)
}
  0x69   : > { %s4149_s20 = scalar_lea.vmem %s4459_s14, 256  ;;  %s4245_s21 = smov [#allocation3]  }
  0x6a   : > { %p4150_p10 = scmp.ne.s32.totalorder %s4459_s14, %s4149_s20  ;;  %s4154_s16 = sshll.u32 %s4245_s21, 4  ;;  %s4155_s16 = int_to_ptr.vmem [resolvable:$false] %s4154_s16 }
  0x6b   : > { %s4156_s29 = scalar_lea.vmem %s4155_s16, 512  ;;  %p4157_p12 = scmp.lt.s32.totalorder %s4459_s14, %s4155_s16 }
  0x6c   : > { %p4152_p3 = pnand %p4150_p10, %p4136_p9  ;;  %p4158_p1 = scmp.lt.s32.totalorder %s4156_s29, %s4149_s20 }
  0x6e   : > { %p4153_p7 = pneg %p4152_p3  ;;  %p4159_p2 = por %p4158_p1, %p4157_p12 }
  0x70   : > { %p4160_p4 = pnand %p4159_p2, %p4153_p7 }
  0x72   : > { %4163 = shalt.err (!%p4160_p4)
}
  0x73   : > { %3997 = dma.hbm_to_vmem [thread:$0]  (!%p4455_p11), %s4453_s10, 256, %s4459_s14, %s4461_s12, %s4243_s13, %s4243_s13, %s4244_s15  }
  0x74   : > { %p5027_p9 = scmp.ne.s32.totalorder %s5021_s9, 0 }
  0x75   : > { %s4495_s17 = sand.u32 (!%p5027_p9), 1, %s4230_s25   ;;  %p5028_p0 = scmp.ne.s32.totalorder (!%p5027_p9), %s5018_s30, 0 }
  0x76   : > { %292 = sbr.rel (%p5027_p9) target bundleno = 2084 (0x824), region = 48  ;;  %s2348_s23 = sshll.u32 (!%p5027_p9), %s4495_s17, 4 }
  0x77   : > { %s295_s11 = scalar_lea.sflag (!%p5027_p9), [#allocation4], %s4495_s17  ;;  %s4501_s8 = scalar_lea.vmem (!%p5027_p9), [#allocation3], %s2348_s23 }
  0x7d   : > { %4209 = dma.done.wait (%p5028_p0), %s295_s11, 256  }
  0x7e   : > { %4211 = vsyncadd (%p5028_p0), %s295_s11, 4294967040  ;;  %p5029_p11 = scmp.eq.s32.totalorder %s4311_s28, 0 }
  0x80   : > { %4213 = dma.done.wait (%p5029_p11), [#allocation7], 7168   ;;  %p5030_p8 = pmov %p5029_p11 }
  0x82   : > { %4215 = vsyncadd (%p5030_p8), [#allocation7], 4294960128  ;;  %p5031_p13 = pmov %p5030_p8 }
  0x83   : > { %p5032_p6 = pmov %p5030_p8 }
  0x84   : > { %4217 = dma.done.wait (%p5031_p13), [#allocation10], 6144  }
  0x85   : > { %4219 = vsyncadd (%p5032_p6), [#allocation10], 4294961152  ;;  %v345_v0 = vld [vmem:[#allocation6] sm:$0xff]  ;;  %v346_v1 = vld [vmem:[#allocation6 + $0x8] sm:$0xff]  ;;  %vm360_vm0 = vcmask 523264   ;;  %v4246_v41 = vmov 0.0  }
  0x86   : > { %v347_v2 = vld [vmem:[#allocation6 + $0x10] sm:$0xff]  ;;  %v3352_v3 = vpack.c.bf16 %v346_v1, %v345_v0  ;;  %v348_v4 = vld [vmem:[#allocation6 + $0x18] sm:$0xff]  ;;  %v349_v6 = vld [vmem:[#allocation6 + $0x20] sm:$0xff]  ;;  %341 = vst [vmem:[#allocation2] sm:$0x1] %v4246_v41  ;;  %s340_s12 = scalar_lea.vmem [#allocation11], %s2348_s23 }
  0x87   : > { %v3356_v5 = vpack.c.bf16 %v348_v4, %v347_v2  ;;  %v350_v7 = vld [vmem:[#allocation6 + $0x28] sm:$0xff]  ;;  %v343_v8 = vld [vmem:[%s4501_s8] sm:$0xff]  ;;  %v468_v13 = vld [vmem:[#allocation8 + $0x98] sm:$0xff]  ;;  %342 = vst [vmem:[#allocation2 + $0x11] sm:$0x1] %v4246_v41  ;;  %s2236_s20 = sshll.u32 %s340_s12, 4  ;;  %s4955_s20 = int_to_ptr.vmem [resolvable:$true] %s2236_s20 }
  0x88   : > { %3353 = vmatprep.subr.bf16.mxu0 %v3352_v3  ;;  %2719 = vmatprep.mubr.msk.f32.mxu0 %vm360_vm0, %v343_v8  ;;  %v465_v9 = vld [vmem:[#allocation8 + $0x80] sm:$0xff]  ;;  %v466_v10 = vld [vmem:[#allocation8 + $0x88] sm:$0xff]  ;;  %v467_v12 = vld [vmem:[#allocation8 + $0x90] sm:$0xff]  ;;  %v3360_v14 = vpack.c.bf16 %v350_v7, %v349_v6  ;;  %s2368_s21 = sshll.u32 %s4311_s28, 8  ;;  %s2223_s23 = scalar_lea.sflag [#allocation5], %s4495_s17 }
  0x89   : > { %3355 = vmatpush3.bf16.msra.mxu0 %v3352_v3  ;;  %v4517_v11 = vpack.c.bf16 %v466_v10, %v465_v9  ;;  %v4519_v15 = vpack.c.bf16 %v468_v13, %v467_v12  ;;  %v469_v16 = vld [vmem:[#allocation8 + $0xa0] sm:$0xff]  ;;  %v470_v17 = vld [vmem:[#allocation8 + $0xa8] sm:$0xff]  ;;  %v351_v18 = vld [vmem:[#allocation6 + $0x30] sm:$0xff]  ;;  %s4961_s11 = scalar_lea.hbm %s5013_s7, %s2368_s21  ;;  %s4164_s28 = scalar_lea.vmem %s4955_s20, 256 }
  0x8a   : > { %3357 = vmatprep.subr.bf16.mxu0 %v3356_v5  ;;  %v352_v19 = vld [vmem:[#allocation6 + $0x38] sm:$0xff]  ;;  %v4524_v20 = vpack.c.bf16 %v470_v17, %v469_v16  ;;  %v471_v22 = vld [vmem:[#allocation8 + $0xb0] sm:$0xff]  ;;  %v473_v25 = vld [vmem:[#allocation8 + $0xc0] sm:$0xff]  ;;  %p4165_p10 = scmp.ne.s32.totalorder %s4955_s20, %s4164_s28 }
  0x8b   : > { %3369 = vmatprep.subr.bf16.mxu1 %v4517_v11  ;;  %v3364_v21 = vpack.c.bf16 %v352_v19, %v351_v18  ;;  %v472_v23 = vld [vmem:[#allocation8 + $0xb8] sm:$0xff]  ;;  %v474_v26 = vld [vmem:[#allocation8 + $0xc8] sm:$0xff]  ;;  %v475_v29 = vld [vmem:[#allocation8 + $0xd0] sm:$0xff] }
  0x8c   : > { %3371 = vmatpush3.bf16.msra.mxu1 %v4517_v11  ;;  %v4528_v24 = vpack.c.bf16 %v472_v23, %v471_v22  ;;  %v344_v27 = vld [vmem:[%s4501_s8 + $0x8] sm:$0xff]  ;;  %v4533_v28 = vpack.c.bf16 %v474_v26, %v473_v25  ;;  %v477_v32 = vld [vmem:[#allocation8 + $0xe0] sm:$0xff]  ;;  %v479_v35 = vld [vmem:[#allocation8 + $0xf0] sm:$0xff]  ;;  %p4166_p3 = pnand %p4165_p10, %p4444_p5  ;;  %s4247_s8 = smov [#allocation11]  }
  0x8d   : > { %3359 = vmatpush3.bf16.msra.mxu0 %v3356_v5  ;;  %3373 = vmatprep.subr.bf16.mxu1 %v4519_v15  ;;  %v476_v30 = vld [vmem:[#allocation8 + $0xd8] sm:$0xff]  ;;  %v478_v33 = vld [vmem:[#allocation8 + $0xe8] sm:$0xff]  ;;  %v446_v38 = vld [vmem:[#allocation8] sm:$0xff]  ;;  %s4168_s30 = sshll.u32 %s4247_s8, 4  ;;  %s4169_s30 = int_to_ptr.vmem [resolvable:$false] %s4168_s30 }
  0x8e   : > { %3361 = vmatprep.subr.bf16.mxu0 %v3360_v14  ;;  %v4549_v31 = vpack.c.bf16 %v476_v30, %v475_v29  ;;  %v4555_v34 = vpack.c.bf16 %v478_v33, %v477_v32  ;;  %v480_v36 = vld [vmem:[#allocation8 + $0xf8] sm:$0xff]  ;;  %v447_v39 = vld [vmem:[#allocation8 + $0x8] sm:$0xff]  ;;  %v448_v44 = vld [vmem:[#allocation8 + $0x10] sm:$0xff]  ;;  %p4167_p7 = pneg %p4166_p3  ;;  %s4170_s9 = scalar_lea.vmem %s4169_s30, 512 }
  0x8f   : > { %v4561_v37 = vpack.c.bf16 %v480_v36, %v479_v35  ;;  %v4567_v40 = vpack.c.bf16 %v447_v39, %v446_v38  ;;  %v2353_v42 = vld [vmem:[%s5008_s2] ss:$0 sm:$0xff]  ;;  %v449_v45 = vld [vmem:[#allocation8 + $0x18] sm:$0xff]  ;;  %v450_v50 = vld [vmem:[#allocation8 + $0x20] sm:$0xff]  ;;  %p4171_p12 = scmp.lt.s32.totalorder %s4955_s20, %s4169_s30  ;;  %p4172_p1 = scmp.lt.s32.totalorder %s4170_s9, %s4164_s28 }
  0x90   : > { %3375 = vmatpush3.bf16.msra.mxu1 %v4519_v15  ;;  %v4579_v49 = vpack.c.bf16 %v449_v45, %v448_v44  ;;  %v451_v51 = vld [vmem:[#allocation8 + $0x28] sm:$0xff]  ;;  %v452_v53 = vld [vmem:[#allocation8 + $0x30] sm:$0xff]  ;;  %v453_v54 = vld [vmem:[#allocation8 + $0x38] sm:$0xff] }
  0x91   : > { %3363 = vmatpush3.bf16.msra.mxu0 %v3360_v14  ;;  %3377 = vmatprep.subr.bf16.mxu1 %v4524_v20  ;;  %v4586_v52 = vpack.c.bf16 %v451_v51, %v450_v50  ;;  %v4590_v56 = vpack.c.bf16 %v453_v54, %v452_v53  ;;  %v454_v57 = vld [vmem:[#allocation8 + $0x40] sm:$0xff]  ;;  %v455_v58 = vld [vmem:[#allocation8 + $0x48] sm:$0xff]  ;;  %v456_v60 = vld [vmem:[#allocation8 + $0x50] sm:$0xff]  ;;  %p4173_p2 = por %p4172_p1, %p4171_p12 }
  0x92   : > { %3365 = vmatprep.subr.bf16.mxu0 %v3364_v21  ;;  %v4594_v59 = vpack.c.bf16 %v455_v58, %v454_v57  ;;  %v457_v61 = vld [vmem:[#allocation8 + $0x58] sm:$0xff]  ;;  %v458_v63 = vld [vmem:[#allocation8 + $0x60] sm:$0xff]  ;;  %v459_v0 = vld [vmem:[#allocation8 + $0x68] sm:$0xff] }
  0x93   : > { %v4598_v62 = vpack.c.bf16 %v457_v61, %v456_v60  ;;  %v4602_v1 = vpack.c.bf16 %v459_v0, %v458_v63  ;;  %v460_v2 = vld [vmem:[#allocation8 + $0x70] sm:$0xff]  ;;  %v461_v3 = vld [vmem:[#allocation8 + $0x78] sm:$0xff]  ;;  %v634_v5 = vld [vmem:[#allocation8 + $0x100] sm:$0xff]  ;;  %p4174_p4 = pnand %p4173_p2, %p4167_p7 }
  0x94   : > { %3379 = vmatpush3.bf16.msra.mxu1 %v4524_v20  ;;  %v4606_v4 = vpack.c.bf16 %v461_v3, %v460_v2  ;;  %v635_v6 = vld [vmem:[#allocation8 + $0x108] sm:$0xff]  ;;  %v636_v8 = vld [vmem:[#allocation8 + $0x110] sm:$0xff]  ;;  %v637_v9 = vld [vmem:[#allocation8 + $0x118] sm:$0xff] }
  0x95   : > { %3367 = vmatpush3.bf16.msra.mxu0 %v3364_v21  ;;  %3381 = vmatprep.subr.bf16.mxu1 %v4528_v24  ;;  %v4610_v7 = vpack.c.bf16 %v635_v6, %v634_v5  ;;  %v4614_v10 = vpack.c.bf16 %v637_v9, %v636_v8  ;;  %v638_v13 = vld [vmem:[#allocation8 + $0x120] sm:$0xff]  ;;  %v639_v14 = vld [vmem:[#allocation8 + $0x128] sm:$0xff]  ;;  %v640_v18 = vld [vmem:[#allocation8 + $0x130] sm:$0xff] }
  0x96   : > { %3465 = vmatprep.subr.bf16.mxu0 %v4517_v11  ;;  %v4618_v17 = vpack.c.bf16 %v639_v14, %v638_v13  ;;  %v641_v19 = vld [vmem:[#allocation8 + $0x138] sm:$0xff]  ;;  %v642_v22 = vld [vmem:[#allocation8 + $0x140] sm:$0xff]  ;;  %v643_v23 = vld [vmem:[#allocation8 + $0x148] sm:$0xff] }
  0x97   : > { %v4622_v21 = vpack.c.bf16 %v641_v19, %v640_v18  ;;  %v4626_v25 = vpack.c.bf16 %v643_v23, %v642_v22  ;;  %v644_v26 = vld [vmem:[#allocation8 + $0x150] sm:$0xff]  ;;  %v646_v30 = vld [vmem:[#allocation8 + $0x160] sm:$0xff]  ;;  %v647_v32 = vld [vmem:[#allocation8 + $0x168] sm:$0xff] }
  0x98   : > { %2720 = vmatmul.mubr.msk.f32.vlgmr.msra.gmra.mrb[0].mxu0 %vm360_vm0, %v344_v27  ;;  %3383 = vmatpush3.bf16.msra.mxu1 %v4528_v24  ;;  %v645_v27 = vld [vmem:[#allocation8 + $0x158] sm:$0xff]  ;;  %v4634_v33 = vpack.c.bf16 %v647_v32, %v646_v30  ;;  %v648_v35 = vld [vmem:[#allocation8 + $0x170] sm:$0xff]  ;;  %v1354_v50 = vld [vmem:[#allocation9 + $0x88] sm:$0xff] }
  0x99   : > { %3385 = vmatprep.subr.bf16.mxu1 %v4533_v28  ;;  %3467 = vmatpush3.bf16.msra.mxu0 %v4517_v11  ;;  %v4630_v29 = vpack.c.bf16 %v645_v27, %v644_v26  ;;  %v649_v36 = vld [vmem:[#allocation8 + $0x178] sm:$0xff]  ;;  %v1355_v51 = vld [vmem:[#allocation9 + $0x90] sm:$0xff]  ;;  %v1357_v57 = vld [vmem:[#allocation9 + $0xa0] sm:$0xff] }
  0x9a   : > { %3469 = vmatprep.subr.bf16.mxu0 %v4519_v15  ;;  %v4638_v38 = vpack.c.bf16 %v649_v36, %v648_v35  ;;  %v1356_v54 = vld [vmem:[#allocation9 + $0x98] sm:$0xff]  ;;  %v1358_v58 = vld [vmem:[#allocation9 + $0xa8] sm:$0xff]  ;;  %v1359_v61 = vld [vmem:[#allocation9 + $0xb0] sm:$0xff] }
  0x9b   : > { %v4707_v60 = vpack.c.bf16 %v1358_v58, %v1357_v57  ;;  %v1360_v63 = vld [vmem:[#allocation9 + $0xb8] sm:$0xff]  ;;  %v1361_v2 = vld [vmem:[#allocation9 + $0xc0] sm:$0xff]  ;;  %v1362_v3 = vld [vmem:[#allocation9 + $0xc8] sm:$0xff] }
  0x9c   : > { %3387 = vmatpush3.bf16.msra.mxu1 %v4533_v28  ;;  %v4711_v0 = vpack.c.bf16 %v1360_v63, %v1359_v61  ;;  %v4715_v5 = vpack.c.bf16 %v1362_v3, %v1361_v2  ;;  %v1334_v22 = vld [vmem:[#allocation9] sm:$0xff]  ;;  %v1335_v23 = vld [vmem:[#allocation9 + $0x8] sm:$0xff]  ;;  %v1336_v32 = vld [vmem:[#allocation9 + $0x10] sm:$0xff] }
  0x9d   : > { %3471 = vmatpush3.bf16.msra.mxu0 %v4519_v15  ;;  %3389 = vmatprep.subr.bf16.mxu1 %v4549_v31  ;;  %v1522_v58 = vld [vmem:[#allocation9 + $0x100] sm:$0xff]  ;;  %v1523_v61 = vld [vmem:[#allocation9 + $0x108] sm:$0xff]  ;;  %v1524_v2 = vld [vmem:[#allocation9 + $0x110] sm:$0xff] }
  0x9e   : > { %3473 = vmatprep.subr.bf16.mxu0 %v4524_v20  ;;  %v4825_v63 = vpack.c.bf16 %v1523_v61, %v1522_v58  ;;  %v1525_v3 = vld [vmem:[#allocation9 + $0x118] sm:$0xff] }
  0xa0   : > { %3391 = vmatpush3.bf16.msra.mxu1 %v4549_v31 }
  0xa1   : > { %3475 = vmatpush3.bf16.msra.mxu0 %v4524_v20  ;;  %3393 = vmatprep.subr.bf16.mxu1 %v4555_v34 }
  0xa2   : > { %3477 = vmatprep.subr.bf16.mxu0 %v4528_v24 }
  0xa4   : > { %3395 = vmatpush3.bf16.msra.mxu1 %v4555_v34 }
  0xa5   : > { %3479 = vmatpush3.bf16.msra.mxu0 %v4528_v24  ;;  %3397 = vmatprep.subr.bf16.mxu1 %v4561_v37 }
  0xa6   : > { %3481 = vmatprep.subr.bf16.mxu0 %v4533_v28 }
  0xa8   : > { %3399 = vmatpush3.bf16.msra.mxu1 %v4561_v37 }
  0xa9   : > { %3483 = vmatpush3.bf16.msra.mxu0 %v4533_v28  ;;  %3401 = vmatprep.subr.bf16.mxu1 %v4567_v40 }
  0xaa   : > { %3485 = vmatprep.subr.bf16.mxu0 %v4549_v31 }
  0xad   : > { %3487 = vmatpush3.bf16.msra.mxu0 %v4549_v31 }
  0xae   : > { %3489 = vmatprep.subr.bf16.mxu0 %v4555_v34 }
  0xb1   : > { %3491 = vmatpush3.bf16.msra.mxu0 %v4555_v34 }
  0xb2   : > { %3493 = vmatprep.subr.bf16.mxu0 %v4561_v37 }
  0xb5   : > { %3495 = vmatpush3.bf16.msra.mxu0 %v4561_v37 }
  0xb6   : > { %3497 = vmatprep.subr.bf16.mxu0 %v4567_v40 }
 0x16b   : > { %v2721_v43 = vpop.f32.mrb[0].mxu0 }
 0x16c   : > { %v4574_v46 = vadd.f32 %v2721_v43, %v2353_v42  ;;  %v433_v47 = vpop.f32.mrb[1].mxu0 }
 0x16d   : > { %v4576_v48 = vadd.f32 %v2353_v42, %v433_v47  ;;  %v1353_v47 = vld [vmem:[#allocation9 + $0x80] sm:$0xff] }
 0x16e   : > { %443 = vst [vmem:[#allocation2 + $0x9] sm:$0xff] %v4574_v46  ;;  %v4700_v53 = vpack.c.bf16 %v1354_v50, %v1353_v47  ;;  %v1347_v47 = vld [vmem:[#allocation9 + $0x68] sm:$0xff] }
 0x16f   : > { %442 = vst [vmem:[#allocation2 + $0x1] sm:$0xff] %v4576_v48  ;;  %2754 = vmatprep.mubr.f32.mxu1 %v4576_v48 }
 0x170   : > { %2755 = vmatmul.mubr.f32.vlgmr.msra.gmra.mrb[0].mxu1 %v4574_v46 }
 0x171   : > { %3403 = vmatpush3.bf16.msra.mxu1 %v4567_v40 }
 0x172   : > { %3405 = vmatprep.subr.bf16.mxu1 %v4579_v49 }
 0x175   : > { %3407 = vmatpush3.bf16.msra.mxu1 %v4579_v49  ;;  %v632_v39 = vld [vmem:[#allocation2 + $0xa] sm:$0xff] }
 0x176   : > { %v444_v55 = vld [vmem:[#allocation2] sm:$0xff]  ;;  %3409 = vmatprep.subr.bf16.mxu1 %v4586_v52  ;;  %v445_v12 = vld [vmem:[#allocation2 + $0x8] sm:$0xff] }
 0x177   : > { %2789 = vmatprep.mubr.f32.mxu1 %v444_v55  ;;  %v631_v16 = vld [vmem:[#allocation2 + $0x2] sm:$0xff]  ;;  %v4702_v55 = vpack.c.bf16 %v1356_v54, %v1355_v51  ;;  %v1349_v54 = vld [vmem:[#allocation9 + $0x78] sm:$0xff] }
 0x178   : > { %v1348_v51 = vld [vmem:[#allocation9 + $0x70] sm:$0xff] }
 0x179   : > { %3411 = vmatpush3.bf16.msra.mxu1 %v4586_v52  ;;  %v4821_v57 = vpack.c.bf16 %v1349_v54, %v1348_v51 }
 0x17a   : > { %3413 = vmatprep.subr.bf16.mxu1 %v4590_v56 }
 0x17d   : > { %3415 = vmatpush3.bf16.msra.mxu1 %v4590_v56 }
 0x17e   : > { %3417 = vmatprep.subr.bf16.mxu1 %v4594_v59 }
 0x181   : > { %3419 = vmatpush3.bf16.msra.mxu1 %v4594_v59 }
 0x182   : > { %3421 = vmatprep.subr.bf16.mxu1 %v4598_v62 }
 0x185   : > { %3423 = vmatpush3.bf16.msra.mxu1 %v4598_v62 }
 0x186   : > { %3425 = vmatprep.subr.bf16.mxu1 %v4602_v1 }
 0x189   : > { %3427 = vmatpush3.bf16.msra.mxu1 %v4602_v1 }
 0x18a   : > { %3429 = vmatprep.subr.bf16.mxu1 %v4606_v4 }
 0x18d   : > { %3431 = vmatpush3.bf16.msra.mxu1 %v4606_v4 }
 0x18e   : > { %3433 = vmatprep.subr.bf16.mxu1 %v4610_v7 }
 0x190   : > { %2790 = vmatmul.mubr.f32.vlgmr.msra.gmra.mrb[0].mxu1 %v445_v12 }
 0x191   : > { %3435 = vmatpush3.bf16.msra.mxu1 %v4610_v7  ;;  %2824 = vmatprep.mubr.f32.mxu1 %v631_v16 }
 0x192   : > { %3437 = vmatprep.subr.bf16.mxu1 %v4614_v10 }
 0x195   : > { %3439 = vmatpush3.bf16.msra.mxu1 %v4614_v10 }
 0x196   : > { %3441 = vmatprep.subr.bf16.mxu1 %v4618_v17 }
 0x199   : > { %3443 = vmatpush3.bf16.msra.mxu1 %v4618_v17 }
 0x19a   : > { %3445 = vmatprep.subr.bf16.mxu1 %v4622_v21 }
 0x19d   : > { %3447 = vmatpush3.bf16.msra.mxu1 %v4622_v21 }
 0x19e   : > { %3449 = vmatprep.subr.bf16.mxu1 %v4626_v25 }
 0x1a1   : > { %3451 = vmatpush3.bf16.msra.mxu1 %v4626_v25 }
 0x1a2   : > { %3453 = vmatprep.subr.bf16.mxu1 %v4630_v29 }
 0x1a5   : > { %3455 = vmatpush3.bf16.msra.mxu1 %v4630_v29 }
 0x1a6   : > { %3457 = vmatprep.subr.bf16.mxu1 %v4634_v33 }
 0x1a9   : > { %3459 = vmatpush3.bf16.msra.mxu1 %v4634_v33 }
 0x1aa   : > { %3461 = vmatprep.subr.bf16.mxu1 %v4638_v38 }
 0x1ad   : > { %3463 = vmatpush3.bf16.msra.mxu1 %v4638_v38 }
 0x1ae   : > { %3561 = vmatprep.subr.bf16.mxu1 %v4517_v11 }
 0x1b0   : > { %2825 = vmatmul.mubr.f32.vlgmr.msra.gmra.mrb[0].mxu1 %v632_v39  ;;  %v1338_v39 = vld [vmem:[#allocation9 + $0x20] sm:$0xff] }
 0x1b1   : > { %3563 = vmatpush3.bf16.msra.mxu1 %v4517_v11  ;;  %v4663_v11 = vld [vmem:[%s5010_s4] ss:$0 sm:$0xff] }
 0x1b2   : > { %3565 = vmatprep.subr.bf16.mxu1 %v4519_v15 }
 0x1b5   : > { %3567 = vmatpush3.bf16.msra.mxu1 %v4519_v15 }
 0x1b6   : > { %3569 = vmatprep.subr.bf16.mxu1 %v4524_v20 }
 0x1b9   : > { %3571 = vmatpush3.bf16.msra.mxu1 %v4524_v20 }
 0x1ba   : > { %3573 = vmatprep.subr.bf16.mxu1 %v4528_v24 }
 0x1bd   : > { %3575 = vmatpush3.bf16.msra.mxu1 %v4528_v24 }
 0x1be   : > { %3577 = vmatprep.subr.bf16.mxu1 %v4533_v28 }
 0x1c1   : > { %3579 = vmatpush3.bf16.msra.mxu1 %v4533_v28 }
 0x1c2   : > { %3581 = vmatprep.subr.bf16.mxu1 %v4549_v31 }
 0x1c5   : > { %3583 = vmatpush3.bf16.msra.mxu1 %v4549_v31 }
 0x1c6   : > { %3585 = vmatprep.subr.bf16.mxu1 %v4555_v34 }
 0x1c9   : > { %3587 = vmatpush3.bf16.msra.mxu1 %v4555_v34 }
 0x1ca   : > { %3589 = vmatprep.subr.bf16.mxu1 %v4561_v37 }
 0x1cd   : > { %3591 = vmatpush3.bf16.msra.mxu1 %v4561_v37 }
 0x1ce   : > { %3593 = vmatprep.subr.bf16.mxu1 %v4567_v40 }
 0x283   : > { %v2826_v15 = vpop.f32.mrb[0].mxu1 }
 0x284   : > { %v735_v20 = vadd.f32 %v2826_v15, %v4663_v11  ;;  %v716_v24 = vpop.f32.mrb[1].mxu1  ;;  %v1339_v15 = vld [vmem:[#allocation9 + $0x28] sm:$0xff] }
 0x285   : > { %v734_v28 = vadd.f32 %v4663_v11, %v716_v24  ;;  %v1341_v24 = vld [vmem:[#allocation9 + $0x38] sm:$0xff] }
 0x286   : > { %v737_v31 = vmax.f32 %v735_v20, 0.0  ;;  %v1340_v20 = vld [vmem:[#allocation9 + $0x30] sm:$0xff] }
 0x287   : > { %v736_v41 = vmax.f32 %v734_v28, 0.0 }
 0x288   : > { %v739_v34 = vadd.f32 %v737_v31, %v4574_v46  ;;  %v4805_v31 = vpack.c.bf16 %v1341_v24, %v1340_v20 }
 0x289   : > { %v738_v42 = vadd.f32 %v736_v41, %v4576_v48  ;;  %v1342_v41 = vld [vmem:[#allocation9 + $0x40] sm:$0xff] }
 0x28a   : > { %741 = vst [vmem:[#allocation2 + $0x9] sm:$0xff] %v739_v34 }
 0x28b   : > { %740 = vst [vmem:[#allocation2 + $0x1] sm:$0xff] %v738_v42  ;;  %2859 = vmatprep.mubr.f32.mxu0 %v738_v42 }
 0x28c   : > { %2860 = vmatmul.mubr.f32.vlgmr.msra.gmra.mrb[2].mxu0 %v739_v34  ;;  %v1343_v34 = vld [vmem:[#allocation9 + $0x48] sm:$0xff] }
 0x28d   : > { %3499 = vmatpush3.bf16.msra.mxu0 %v4567_v40  ;;  %v4809_v42 = vpack.c.bf16 %v1343_v34, %v1342_v41 }
 0x28e   : > { %3501 = vmatprep.subr.bf16.mxu0 %v4579_v49 }
 0x291   : > { %3503 = vmatpush3.bf16.msra.mxu0 %v4579_v49  ;;  %v929_v45 = vld [vmem:[#allocation2 + $0xa] sm:$0xff] }
 0x292   : > { %v742_v37 = vld [vmem:[#allocation2] sm:$0xff]  ;;  %3505 = vmatprep.subr.bf16.mxu0 %v4586_v52  ;;  %v743_v43 = vld [vmem:[#allocation2 + $0x8] sm:$0xff] }
 0x293   : > { %2894 = vmatprep.mubr.f32.mxu0 %v742_v37  ;;  %v928_v44 = vld [vmem:[#allocation2 + $0x2] sm:$0xff] }
 0x294   : > { %v1344_v37 = vld [vmem:[#allocation9 + $0x50] sm:$0xff] }
 0x295   : > { %3507 = vmatpush3.bf16.msra.mxu0 %v4586_v52 }
 0x296   : > { %3509 = vmatprep.subr.bf16.mxu0 %v4590_v56 }
 0x299   : > { %3511 = vmatpush3.bf16.msra.mxu0 %v4590_v56 }
 0x29a   : > { %3513 = vmatprep.subr.bf16.mxu0 %v4594_v59 }
 0x29d   : > { %3515 = vmatpush3.bf16.msra.mxu0 %v4594_v59 }
 0x29e   : > { %3517 = vmatprep.subr.bf16.mxu0 %v4598_v62 }
 0x2a1   : > { %3519 = vmatpush3.bf16.msra.mxu0 %v4598_v62 }
 0x2a2   : > { %3521 = vmatprep.subr.bf16.mxu0 %v4602_v1 }
 0x2a5   : > { %3523 = vmatpush3.bf16.msra.mxu0 %v4602_v1 }
 0x2a6   : > { %3525 = vmatprep.subr.bf16.mxu0 %v4606_v4 }
 0x2a9   : > { %3527 = vmatpush3.bf16.msra.mxu0 %v4606_v4 }
 0x2aa   : > { %3529 = vmatprep.subr.bf16.mxu0 %v4610_v7 }
 0x2ac   : > { %2895 = vmatmul.mubr.f32.vlgmr.msra.gmra.mrb[2].mxu0 %v743_v43  ;;  %v1345_v43 = vld [vmem:[#allocation9 + $0x58] sm:$0xff] }
 0x2ad   : > { %3531 = vmatpush3.bf16.msra.mxu0 %v4610_v7  ;;  %2929 = vmatprep.mubr.f32.mxu0 %v928_v44  ;;  %v4813_v44 = vpack.c.bf16 %v1345_v43, %v1344_v37 }
 0x2ae   : > { %3533 = vmatprep.subr.bf16.mxu0 %v4614_v10 }
 0x2b1   : > { %3535 = vmatpush3.bf16.msra.mxu0 %v4614_v10 }
 0x2b2   : > { %3537 = vmatprep.subr.bf16.mxu0 %v4618_v17 }
 0x2b5   : > { %3539 = vmatpush3.bf16.msra.mxu0 %v4618_v17 }
 0x2b6   : > { %3541 = vmatprep.subr.bf16.mxu0 %v4622_v21 }
 0x2b9   : > { %3543 = vmatpush3.bf16.msra.mxu0 %v4622_v21 }
 0x2ba   : > { %3545 = vmatprep.subr.bf16.mxu0 %v4626_v25 }
 0x2bd   : > { %3547 = vmatpush3.bf16.msra.mxu0 %v4626_v25 }
 0x2be   : > { %3549 = vmatprep.subr.bf16.mxu0 %v4630_v29 }
 0x2c1   : > { %3551 = vmatpush3.bf16.msra.mxu0 %v4630_v29 }
 0x2c2   : > { %3553 = vmatprep.subr.bf16.mxu0 %v4634_v33 }
 0x2c5   : > { %3555 = vmatpush3.bf16.msra.mxu0 %v4634_v33 }
 0x2c6   : > { %3557 = vmatprep.subr.bf16.mxu0 %v4638_v38 }
 0x2c9   : > { %3559 = vmatpush3.bf16.msra.mxu0 %v4638_v38 }
 0x2ca   : > { %3657 = vmatprep.subr.bf16.mxu0 %v4700_v53 }
 0x2cc   : > { %2930 = vmatmul.mubr.f32.vlgmr.msra.gmra.mrb[2].mxu0 %v929_v45  ;;  %v1346_v45 = vld [vmem:[#allocation9 + $0x60] sm:$0xff] }
 0x2cd   : > { %3659 = vmatpush3.bf16.msra.mxu0 %v4700_v53  ;;  %v4817_v50 = vpack.c.bf16 %v1347_v47, %v1346_v45 }
 0x2ce   : > { %3661 = vmatprep.subr.bf16.mxu0 %v4702_v55 }
 0x2d1   : > { %3663 = vmatpush3.bf16.msra.mxu0 %v4702_v55 }
 0x2d2   : > { %3665 = vmatprep.subr.bf16.mxu0 %v4707_v60 }
 0x2d5   : > { %3667 = vmatpush3.bf16.msra.mxu0 %v4707_v60 }
 0x2d6   : > { %3669 = vmatprep.subr.bf16.mxu0 %v4711_v0 }
 0x2d9   : > { %3671 = vmatpush3.bf16.msra.mxu0 %v4711_v0 }
 0x2da   : > { %3673 = vmatprep.subr.bf16.mxu0 %v4715_v5 }
 0x2dd   : > { %3675 = vmatpush3.bf16.msra.mxu0 %v4715_v5 }
 0x39f   : > { %v2931_v6 = vpop.f32.mrb[2].mxu0 }
 0x3a0   : > { %v1031_v8 = vadd.f32 %v2931_v6, %v4663_v11  ;;  %v1012_v9 = vpop.f32.mrb[3].mxu0  ;;  %v4829_v6 = vpack.c.bf16 %v1525_v3, %v1524_v2 }
 0x3a1   : > { %v1030_v12 = vadd.f32 %v4663_v11, %v1012_v9  ;;  %v1526_v9 = vld [vmem:[#allocation9 + $0x120] sm:$0xff] }
 0x3a2   : > { %v1033_v13 = vmax.f32 %v1031_v8, 0.0 }
 0x3a3   : > { %v1032_v14 = vmax.f32 %v1030_v12, 0.0  ;;  %v1527_v12 = vld [vmem:[#allocation9 + $0x128] sm:$0xff] }
 0x3a4   : > { %v1035_v16 = vadd.f32 %v1033_v13, %v4574_v46 }
 0x3a5   : > { %v1034_v18 = vadd.f32 %v1032_v14, %v4576_v48  ;;  %v4833_v14 = vpack.c.bf16 %v1527_v12, %v1526_v9 }
 0x3a6   : > { %1037 = vst [vmem:[#allocation2 + $0x9] sm:$0xff] %v1035_v16 }
 0x3a7   : > { %1036 = vst [vmem:[#allocation2 + $0x1] sm:$0xff] %v1034_v18  ;;  %2964 = vmatprep.mubr.f32.mxu1 %v1034_v18  ;;  %v1529_v18 = vld [vmem:[#allocation9 + $0x138] sm:$0xff] }
 0x3a8   : > { %2965 = vmatmul.mubr.f32.vlgmr.msra.gmra.mrb[2].mxu1 %v1035_v16  ;;  %v1528_v16 = vld [vmem:[#allocation9 + $0x130] sm:$0xff] }
 0x3a9   : > { %3595 = vmatpush3.bf16.msra.mxu1 %v4567_v40 }
 0x3aa   : > { %3597 = vmatprep.subr.bf16.mxu1 %v4579_v49 }
 0x3ad   : > { %3599 = vmatpush3.bf16.msra.mxu1 %v4579_v49 }
 0x3ae   : > { %v1038_v19 = vld [vmem:[#allocation2] sm:$0xff]  ;;  %3601 = vmatprep.subr.bf16.mxu1 %v4586_v52  ;;  %v1039_v40 = vld [vmem:[#allocation2 + $0x8] sm:$0xff] }
 0x3af   : > { %2999 = vmatprep.mubr.f32.mxu1 %v1038_v19  ;;  %v1224_v49 = vld [vmem:[#allocation2 + $0x2] sm:$0xff]  ;;  %v4837_v19 = vpack.c.bf16 %v1529_v18, %v1528_v16 }
 0x3b1   : > { %3603 = vmatpush3.bf16.msra.mxu1 %v4586_v52  ;;  %v1225_v52 = vld [vmem:[#allocation2 + $0xa] sm:$0xff] }
 0x3b2   : > { %3605 = vmatprep.subr.bf16.mxu1 %v4590_v56 }
 0x3b5   : > { %3607 = vmatpush3.bf16.msra.mxu1 %v4590_v56  ;;  %v1363_v56 = vld [vmem:[#allocation9 + $0xd0] sm:$0xff] }
 0x3b6   : > { %3609 = vmatprep.subr.bf16.mxu1 %v4594_v59 }
 0x3b9   : > { %3611 = vmatpush3.bf16.msra.mxu1 %v4594_v59  ;;  %v1364_v59 = vld [vmem:[#allocation9 + $0xd8] sm:$0xff] }
 0x3ba   : > { %3613 = vmatprep.subr.bf16.mxu1 %v4598_v62 }
 0x3bd   : > { %3615 = vmatpush3.bf16.msra.mxu1 %v4598_v62  ;;  %v4765_v62 = vpack.c.bf16 %v1364_v59, %v1363_v56  ;;  %v1532_v56 = vld [vmem:[#allocation9 + $0x150] sm:$0xff]  ;;  %v1533_v59 = vld [vmem:[#allocation9 + $0x158] sm:$0xff] }
 0x3be   : > { %3617 = vmatprep.subr.bf16.mxu1 %v4602_v1 }
 0x3bf   : > { %3677 = vmatprep.subr.bf16.mxu0 %v4765_v62 }
 0x3c0   : > { %3679 = vmatpush3.bf16.msra.mxu0 %v4765_v62 }
 0x3c1   : > { %3619 = vmatpush3.bf16.msra.mxu1 %v4602_v1  ;;  %v1365_v1 = vld [vmem:[#allocation9 + $0xe0] sm:$0xff] }
 0x3c2   : > { %3621 = vmatprep.subr.bf16.mxu1 %v4606_v4 }
 0x3c5   : > { %3623 = vmatpush3.bf16.msra.mxu1 %v4606_v4  ;;  %v1366_v4 = vld [vmem:[#allocation9 + $0xe8] sm:$0xff] }
 0x3c6   : > { %3625 = vmatprep.subr.bf16.mxu1 %v4610_v7 }
 0x3c8   : > { %3000 = vmatmul.mubr.f32.vlgmr.msra.gmra.mrb[2].mxu1 %v1039_v40  ;;  %v1530_v40 = vld [vmem:[#allocation9 + $0x140] sm:$0xff] }
 0x3c9   : > { %3627 = vmatpush3.bf16.msra.mxu1 %v4610_v7  ;;  %3034 = vmatprep.mubr.f32.mxu1 %v1224_v49  ;;  %v4771_v7 = vpack.c.bf16 %v1366_v4, %v1365_v1  ;;  %v1531_v49 = vld [vmem:[#allocation9 + $0x148] sm:$0xff]  ;;  %v4845_v1 = vpack.c.bf16 %v1533_v59, %v1532_v56  ;;  %v1534_v4 = vld [vmem:[#allocation9 + $0x160] sm:$0xff] }
 0x3ca   : > { %3629 = vmatprep.subr.bf16.mxu1 %v4614_v10 }
 0x3cb   : > { %3681 = vmatprep.subr.bf16.mxu0 %v4771_v7 }
 0x3cc   : > { %3683 = vmatpush3.bf16.msra.mxu0 %v4771_v7 }
 0x3cd   : > { %3631 = vmatpush3.bf16.msra.mxu1 %v4614_v10  ;;  %v1367_v10 = vld [vmem:[#allocation9 + $0xf0] sm:$0xff] }
 0x3ce   : > { %3633 = vmatprep.subr.bf16.mxu1 %v4618_v17 }
 0x3d1   : > { %3635 = vmatpush3.bf16.msra.mxu1 %v4618_v17  ;;  %v1368_v17 = vld [vmem:[#allocation9 + $0xf8] sm:$0xff] }
 0x3d2   : > { %3637 = vmatprep.subr.bf16.mxu1 %v4622_v21 }
 0x3d5   : > { %3639 = vmatpush3.bf16.msra.mxu1 %v4622_v21  ;;  %v4777_v21 = vpack.c.bf16 %v1368_v17, %v1367_v10  ;;  %v1535_v10 = vld [vmem:[#allocation9 + $0x168] sm:$0xff] }
 0x3d6   : > { %3641 = vmatprep.subr.bf16.mxu1 %v4626_v25  ;;  %v4849_v17 = vpack.c.bf16 %v1535_v10, %v1534_v4 }
 0x3d7   : > { %3685 = vmatprep.subr.bf16.mxu0 %v4777_v21 }
 0x3d8   : > { %3687 = vmatpush3.bf16.msra.mxu0 %v4777_v21 }
 0x3d9   : > { %3643 = vmatpush3.bf16.msra.mxu1 %v4626_v25  ;;  %v4783_v25 = vpack.c.bf16 %v1335_v23, %v1334_v22  ;;  %v1536_v22 = vld [vmem:[#allocation9 + $0x170] sm:$0xff]  ;;  %v1537_v23 = vld [vmem:[#allocation9 + $0x178] sm:$0xff] }
 0x3da   : > { %3645 = vmatprep.subr.bf16.mxu1 %v4630_v29 }
 0x3db   : > { %3689 = vmatprep.subr.bf16.mxu0 %v4783_v25 }
 0x3dd   : > { %3647 = vmatpush3.bf16.msra.mxu1 %v4630_v29 }
 0x3de   : > { %3649 = vmatprep.subr.bf16.mxu1 %v4634_v33 }
 0x3e1   : > { %3651 = vmatpush3.bf16.msra.mxu1 %v4634_v33  ;;  %v1337_v33 = vld [vmem:[#allocation9 + $0x18] sm:$0xff] }
 0x3e2   : > { %3653 = vmatprep.subr.bf16.mxu1 %v4638_v38 }
 0x3e5   : > { %3655 = vmatpush3.bf16.msra.mxu1 %v4638_v38  ;;  %v4794_v38 = vpack.c.bf16 %v1337_v33, %v1336_v32 }
 0x3e6   : > { %3753 = vmatprep.subr.bf16.mxu1 %v4700_v53 }
 0x3e8   : > { %3035 = vmatmul.mubr.f32.vlgmr.msra.gmra.mrb[2].mxu1 %v1225_v52  ;;  %v4841_v52 = vpack.c.bf16 %v1531_v49, %v1530_v40 }
 0x3e9   : > { %3755 = vmatpush3.bf16.msra.mxu1 %v4700_v53 }
 0x3ea   : > { %3757 = vmatprep.subr.bf16.mxu1 %v4702_v55 }
 0x3ed   : > { %3759 = vmatpush3.bf16.msra.mxu1 %v4702_v55 }
 0x3ee   : > { %3761 = vmatprep.subr.bf16.mxu1 %v4707_v60 }
 0x3f1   : > { %3763 = vmatpush3.bf16.msra.mxu1 %v4707_v60 }
 0x3f2   : > { %3765 = vmatprep.subr.bf16.mxu1 %v4711_v0 }
 0x3f5   : > { %3767 = vmatpush3.bf16.msra.mxu1 %v4711_v0 }
 0x3f6   : > { %3769 = vmatprep.subr.bf16.mxu1 %v4715_v5 }
 0x3f9   : > { %3771 = vmatpush3.bf16.msra.mxu1 %v4715_v5 }
 0x3fa   : > { %3773 = vmatprep.subr.bf16.mxu1 %v4765_v62 }
 0x3fd   : > { %3775 = vmatpush3.bf16.msra.mxu1 %v4765_v62 }
 0x3fe   : > { %3777 = vmatprep.subr.bf16.mxu1 %v4771_v7 }
 0x401   : > { %3779 = vmatpush3.bf16.msra.mxu1 %v4771_v7 }
 0x402   : > { %3781 = vmatprep.subr.bf16.mxu1 %v4777_v21 }
 0x405   : > { %3783 = vmatpush3.bf16.msra.mxu1 %v4777_v21 }
 0x406   : > { %3785 = vmatprep.subr.bf16.mxu1 %v4783_v25 }
 0x4bb   : > { %v3036_v26 = vpop.f32.mrb[2].mxu1 }
 0x4bc   : > { %v1327_v27 = vadd.f32 %v3036_v26, %v4663_v11  ;;  %v1308_v29 = vpop.f32.mrb[3].mxu1  ;;  %v4853_v26 = vpack.c.bf16 %v1537_v23, %v1536_v22 }
 0x4bd   : > { %v1326_v30 = vadd.f32 %v4663_v11, %v1308_v29  ;;  %v4801_v11 = vpack.c.bf16 %v1339_v15, %v1338_v39 }
 0x4be   : > { %v4789_v35 = vmax.f32 %v1327_v27, 0.0 }
 0x4bf   : > { %v4791_v36 = vmax.f32 %v1326_v30, 0.0 }
 0x4c0   : > { %1331 = vst [vmem:[#allocation2 + $0x9] sm:$0xff] %v4789_v35 }
 0x4c1   : > { %1330 = vst [vmem:[#allocation2 + $0x1] sm:$0xff] %v4791_v36  ;;  %3069 = vmatprep.mubr.f32.mxu0 %v4791_v36 }
 0x4c2   : > { %3070 = vmatmul.mubr.f32.vlgmr.msra.gmra.mrb[4].mxu0 %v4789_v35 }
 0x4c3   : > { %3691 = vmatpush3.bf16.msra.mxu0 %v4783_v25 }
 0x4c4   : > { %3693 = vmatprep.subr.bf16.mxu0 %v4794_v38 }
 0x4c7   : > { %3695 = vmatpush3.bf16.msra.mxu0 %v4794_v38  ;;  %v1520_v27 = vld [vmem:[#allocation2 + $0xa] sm:$0xff] }
 0x4c8   : > { %v1332_v28 = vld [vmem:[#allocation2] sm:$0xff]  ;;  %3697 = vmatprep.subr.bf16.mxu0 %v4801_v11  ;;  %v1333_v8 = vld [vmem:[#allocation2 + $0x8] sm:$0xff] }
 0x4c9   : > { %3104 = vmatprep.mubr.f32.mxu0 %v1332_v28  ;;  %v1519_v13 = vld [vmem:[#allocation2 + $0x2] sm:$0xff] }
 0x4cb   : > { %3699 = vmatpush3.bf16.msra.mxu0 %v4801_v11 }
 0x4cc   : > { %3701 = vmatprep.subr.bf16.mxu0 %v4805_v31 }
 0x4cf   : > { %3703 = vmatpush3.bf16.msra.mxu0 %v4805_v31 }
 0x4d0   : > { %3705 = vmatprep.subr.bf16.mxu0 %v4809_v42 }
 0x4d3   : > { %3707 = vmatpush3.bf16.msra.mxu0 %v4809_v42 }
 0x4d4   : > { %3709 = vmatprep.subr.bf16.mxu0 %v4813_v44 }
 0x4d7   : > { %3711 = vmatpush3.bf16.msra.mxu0 %v4813_v44 }
 0x4d8   : > { %3713 = vmatprep.subr.bf16.mxu0 %v4817_v50 }
 0x4db   : > { %3715 = vmatpush3.bf16.msra.mxu0 %v4817_v50 }
 0x4dc   : > { %3717 = vmatprep.subr.bf16.mxu0 %v4821_v57 }
 0x4df   : > { %3719 = vmatpush3.bf16.msra.mxu0 %v4821_v57 }
 0x4e0   : > { %3721 = vmatprep.subr.bf16.mxu0 %v4825_v63 }
 0x4e2   : > { %3105 = vmatmul.mubr.f32.vlgmr.msra.gmra.mrb[4].mxu0 %v1333_v8 }
 0x4e3   : > { %3723 = vmatpush3.bf16.msra.mxu0 %v4825_v63  ;;  %3139 = vmatprep.mubr.f32.mxu0 %v1519_v13 }
 0x4e4   : > { %3725 = vmatprep.subr.bf16.mxu0 %v4829_v6 }
 0x4e7   : > { %3727 = vmatpush3.bf16.msra.mxu0 %v4829_v6 }
 0x4e8   : > { %3729 = vmatprep.subr.bf16.mxu0 %v4833_v14 }
 0x4eb   : > { %3731 = vmatpush3.bf16.msra.mxu0 %v4833_v14 }
 0x4ec   : > { %3733 = vmatprep.subr.bf16.mxu0 %v4837_v19 }
 0x4ef   : > { %3735 = vmatpush3.bf16.msra.mxu0 %v4837_v19 }
 0x4f0   : > { %3737 = vmatprep.subr.bf16.mxu0 %v4841_v52 }
 0x4f3   : > { %3739 = vmatpush3.bf16.msra.mxu0 %v4841_v52 }
 0x4f4   : > { %3741 = vmatprep.subr.bf16.mxu0 %v4845_v1 }
 0x4f7   : > { %3743 = vmatpush3.bf16.msra.mxu0 %v4845_v1 }
 0x4f8   : > { %3745 = vmatprep.subr.bf16.mxu0 %v4849_v17 }
 0x4fb   : > { %3747 = vmatpush3.bf16.msra.mxu0 %v4849_v17 }
 0x4fc   : > { %3749 = vmatprep.subr.bf16.mxu0 %v4853_v26 }
 0x4ff   : > { %3751 = vmatpush3.bf16.msra.mxu0 %v4853_v26 }
 0x500   : > { %3849 = vmatprep.subr.bf16.mxu0 %v4700_v53 }
 0x502   : > { %3140 = vmatmul.mubr.f32.vlgmr.msra.gmra.mrb[4].mxu0 %v1520_v27 }
 0x503   : > { %3851 = vmatpush3.bf16.msra.mxu0 %v4700_v53  ;;  %v4878_v53 = vld [vmem:[%s5012_s6] ss:$0 sm:$0xff] }
 0x504   : > { %3853 = vmatprep.subr.bf16.mxu0 %v4702_v55 }
 0x507   : > { %3855 = vmatpush3.bf16.msra.mxu0 %v4702_v55 }
 0x508   : > { %3857 = vmatprep.subr.bf16.mxu0 %v4707_v60 }
 0x50b   : > { %3859 = vmatpush3.bf16.msra.mxu0 %v4707_v60 }
 0x50c   : > { %3861 = vmatprep.subr.bf16.mxu0 %v4711_v0 }
 0x50f   : > { %3863 = vmatpush3.bf16.msra.mxu0 %v4711_v0 }
 0x510   : > { %3865 = vmatprep.subr.bf16.mxu0 %v4715_v5 }
 0x513   : > { %3867 = vmatpush3.bf16.msra.mxu0 %v4715_v5 }
 0x514   : > { %3869 = vmatprep.subr.bf16.mxu0 %v4765_v62 }
 0x517   : > { %3871 = vmatpush3.bf16.msra.mxu0 %v4765_v62 }
 0x518   : > { %3873 = vmatprep.subr.bf16.mxu0 %v4771_v7 }
 0x51b   : > { %3875 = vmatpush3.bf16.msra.mxu0 %v4771_v7 }
 0x51c   : > { %3877 = vmatprep.subr.bf16.mxu0 %v4777_v21 }
 0x51f   : > { %3879 = vmatpush3.bf16.msra.mxu0 %v4777_v21 }
 0x520   : > { %3881 = vmatprep.subr.bf16.mxu0 %v4783_v25 }
 0x5d5   : > { %v3141_v55 = vpop.f32.mrb[4].mxu0 }
 0x5d6   : > { %v1623_v60 = vadd.f32 %v3141_v55, %v4878_v53  ;;  %v1604_v0 = vpop.f32.mrb[5].mxu0 }
 0x5d7   : > { %v1622_v5 = vadd.f32 %v4878_v53, %v1604_v0 }
 0x5d8   : > { %v1625_v62 = vmax.f32 %v1623_v60, 0.0 }
 0x5d9   : > { %v1624_v29 = vmax.f32 %v1622_v5, 0.0 }
 0x5da   : > { %v1627_v7 = vadd.f32 %v1625_v62, %v4789_v35 }
 0x5db   : > { %v1626_v30 = vadd.f32 %v1624_v29, %v4791_v36 }
 0x5dc   : > { %1629 = vst [vmem:[#allocation2 + $0x9] sm:$0xff] %v1627_v7 }
 0x5dd   : > { %1628 = vst [vmem:[#allocation2 + $0x1] sm:$0xff] %v1626_v30  ;;  %3174 = vmatprep.mubr.f32.mxu1 %v1626_v30 }
 0x5de   : > { %3175 = vmatmul.mubr.f32.vlgmr.msra.gmra.mrb[4].mxu1 %v1627_v7 }
 0x5df   : > { %3787 = vmatpush3.bf16.msra.mxu1 %v4783_v25 }
 0x5e0   : > { %3789 = vmatprep.subr.bf16.mxu1 %v4794_v38 }
 0x5e3   : > { %3791 = vmatpush3.bf16.msra.mxu1 %v4794_v38  ;;  %v1817_v39 = vld [vmem:[#allocation2 + $0xa] sm:$0xff] }
 0x5e4   : > { %v1630_v21 = vld [vmem:[#allocation2] sm:$0xff]  ;;  %3793 = vmatprep.subr.bf16.mxu1 %v4801_v11  ;;  %v1631_v32 = vld [vmem:[#allocation2 + $0x8] sm:$0xff] }
 0x5e5   : > { %3209 = vmatprep.mubr.f32.mxu1 %v1630_v21  ;;  %v1816_v33 = vld [vmem:[#allocation2 + $0x2] sm:$0xff] }
 0x5e7   : > { %3795 = vmatpush3.bf16.msra.mxu1 %v4801_v11 }
 0x5e8   : > { %3797 = vmatprep.subr.bf16.mxu1 %v4805_v31 }
 0x5eb   : > { %3799 = vmatpush3.bf16.msra.mxu1 %v4805_v31 }
 0x5ec   : > { %3801 = vmatprep.subr.bf16.mxu1 %v4809_v42 }
 0x5ef   : > { %3803 = vmatpush3.bf16.msra.mxu1 %v4809_v42 }
 0x5f0   : > { %3805 = vmatprep.subr.bf16.mxu1 %v4813_v44 }
 0x5f3   : > { %3807 = vmatpush3.bf16.msra.mxu1 %v4813_v44 }
 0x5f4   : > { %3809 = vmatprep.subr.bf16.mxu1 %v4817_v50 }
 0x5f7   : > { %3811 = vmatpush3.bf16.msra.mxu1 %v4817_v50 }
 0x5f8   : > { %3813 = vmatprep.subr.bf16.mxu1 %v4821_v57 }
 0x5fb   : > { %3815 = vmatpush3.bf16.msra.mxu1 %v4821_v57 }
 0x5fc   : > { %3817 = vmatprep.subr.bf16.mxu1 %v4825_v63 }
 0x5fe   : > { %3210 = vmatmul.mubr.f32.vlgmr.msra.gmra.mrb[4].mxu1 %v1631_v32 }
 0x5ff   : > { %3819 = vmatpush3.bf16.msra.mxu1 %v4825_v63  ;;  %3244 = vmatprep.mubr.f32.mxu1 %v1816_v33 }
 0x600   : > { %3821 = vmatprep.subr.bf16.mxu1 %v4829_v6 }
 0x603   : > { %3823 = vmatpush3.bf16.msra.mxu1 %v4829_v6 }
 0x604   : > { %3825 = vmatprep.subr.bf16.mxu1 %v4833_v14 }
 0x607   : > { %3827 = vmatpush3.bf16.msra.mxu1 %v4833_v14 }
 0x608   : > { %3829 = vmatprep.subr.bf16.mxu1 %v4837_v19 }
 0x60b   : > { %3831 = vmatpush3.bf16.msra.mxu1 %v4837_v19 }
 0x60c   : > { %3833 = vmatprep.subr.bf16.mxu1 %v4841_v52 }
 0x60f   : > { %3835 = vmatpush3.bf16.msra.mxu1 %v4841_v52 }
 0x610   : > { %3837 = vmatprep.subr.bf16.mxu1 %v4845_v1 }
 0x613   : > { %3839 = vmatpush3.bf16.msra.mxu1 %v4845_v1 }
 0x614   : > { %3841 = vmatprep.subr.bf16.mxu1 %v4849_v17 }
 0x617   : > { %3843 = vmatpush3.bf16.msra.mxu1 %v4849_v17 }
 0x618   : > { %3845 = vmatprep.subr.bf16.mxu1 %v4853_v26 }
 0x61b   : > { %3847 = vmatpush3.bf16.msra.mxu1 %v4853_v26 }
 0x61e   : > { %3245 = vmatmul.mubr.f32.vlgmr.msra.gmra.mrb[4].mxu1 %v1817_v39 }
 0x6f1   : > { %v3246_v15 = vpop.f32.mrb[4].mxu1 }
 0x6f2   : > { %v1919_v20 = vadd.f32 %v3246_v15, %v4878_v53  ;;  %v1900_v24 = vpop.f32.mrb[5].mxu1 }
 0x6f3   : > { %v1918_v28 = vadd.f32 %v4878_v53, %v1900_v24 }
 0x6f4   : > { %v1921_v41 = vmax.f32 %v1919_v20, 0.0 }
 0x6f5   : > { %v1920_v34 = vmax.f32 %v1918_v28, 0.0 }
 0x6f6   : > { %v1923_v37 = vadd.f32 %v1921_v41, %v4789_v35 }
 0x6f7   : > { %v1922_v43 = vadd.f32 %v1920_v34, %v4791_v36 }
 0x6f8   : > { %1925 = vst [vmem:[#allocation2 + $0x9] sm:$0xff] %v1923_v37 }
 0x6f9   : > { %1924 = vst [vmem:[#allocation2 + $0x1] sm:$0xff] %v1922_v43  ;;  %3279 = vmatprep.mubr.f32.mxu0 %v1922_v43 }
 0x6fa   : > { %3280 = vmatmul.mubr.f32.vlgmr.msra.gmra.mrb[6].mxu0 %v1923_v37 }
 0x6fb   : > { %3883 = vmatpush3.bf16.msra.mxu0 %v4783_v25 }
 0x6fc   : > { %3885 = vmatprep.subr.bf16.mxu0 %v4794_v38 }
 0x6ff   : > { %3887 = vmatpush3.bf16.msra.mxu0 %v4794_v38  ;;  %v2113_v36 = vld [vmem:[#allocation2 + $0xa] sm:$0xff] }
 0x700   : > { %v1926_v45 = vld [vmem:[#allocation2] sm:$0xff]  ;;  %3889 = vmatprep.subr.bf16.mxu0 %v4801_v11  ;;  %v1927_v25 = vld [vmem:[#allocation2 + $0x8] sm:$0xff] }
 0x701   : > { %3314 = vmatprep.mubr.f32.mxu0 %v1926_v45  ;;  %v2112_v35 = vld [vmem:[#allocation2 + $0x2] sm:$0xff] }
 0x703   : > { %3891 = vmatpush3.bf16.msra.mxu0 %v4801_v11 }
 0x704   : > { %3893 = vmatprep.subr.bf16.mxu0 %v4805_v31 }
 0x707   : > { %3895 = vmatpush3.bf16.msra.mxu0 %v4805_v31 }
 0x708   : > { %3897 = vmatprep.subr.bf16.mxu0 %v4809_v42 }
 0x70b   : > { %3899 = vmatpush3.bf16.msra.mxu0 %v4809_v42 }
 0x70c   : > { %3901 = vmatprep.subr.bf16.mxu0 %v4813_v44 }
 0x70f   : > { %3903 = vmatpush3.bf16.msra.mxu0 %v4813_v44 }
 0x710   : > { %3905 = vmatprep.subr.bf16.mxu0 %v4817_v50 }
 0x713   : > { %3907 = vmatpush3.bf16.msra.mxu0 %v4817_v50 }
 0x714   : > { %3909 = vmatprep.subr.bf16.mxu0 %v4821_v57 }
 0x717   : > { %3911 = vmatpush3.bf16.msra.mxu0 %v4821_v57 }
 0x718   : > { %3913 = vmatprep.subr.bf16.mxu0 %v4825_v63 }
 0x71a   : > { %3315 = vmatmul.mubr.f32.vlgmr.msra.gmra.mrb[6].mxu0 %v1927_v25 }
 0x71b   : > { %3915 = vmatpush3.bf16.msra.mxu0 %v4825_v63  ;;  %3349 = vmatprep.mubr.f32.mxu0 %v2112_v35 }
 0x71c   : > { %3917 = vmatprep.subr.bf16.mxu0 %v4829_v6 }
 0x71f   : > { %3919 = vmatpush3.bf16.msra.mxu0 %v4829_v6 }
 0x720   : > { %3921 = vmatprep.subr.bf16.mxu0 %v4833_v14 }
 0x723   : > { %3923 = vmatpush3.bf16.msra.mxu0 %v4833_v14 }
 0x724   : > { %3925 = vmatprep.subr.bf16.mxu0 %v4837_v19 }
 0x727   : > { %3927 = vmatpush3.bf16.msra.mxu0 %v4837_v19 }
 0x728   : > { %3929 = vmatprep.subr.bf16.mxu0 %v4841_v52 }
 0x72b   : > { %3931 = vmatpush3.bf16.msra.mxu0 %v4841_v52 }
 0x72c   : > { %3933 = vmatprep.subr.bf16.mxu0 %v4845_v1 }
 0x72f   : > { %3935 = vmatpush3.bf16.msra.mxu0 %v4845_v1 }
 0x730   : > { %3937 = vmatprep.subr.bf16.mxu0 %v4849_v17 }
 0x733   : > { %3939 = vmatpush3.bf16.msra.mxu0 %v4849_v17 }
 0x734   : > { %3941 = vmatprep.subr.bf16.mxu0 %v4853_v26 }
 0x737   : > { %3943 = vmatpush3.bf16.msra.mxu0 %v4853_v26 }
 0x73a   : > { %3350 = vmatmul.mubr.f32.vlgmr.msra.gmra.mrb[6].mxu0 %v2113_v36 }
 0x80d   : > { %v3351_v38 = vpop.f32.mrb[6].mxu0 }
 0x80e   : > { %v2215_v11 = vadd.f32 %v3351_v38, %v4878_v53  ;;  %v2196_v31 = vpop.f32.mrb[7].mxu0 }
 0x80f   : > { %v2214_v42 = vadd.f32 %v4878_v53, %v2196_v31 }
 0x810   : > { %v2217_v44 = vmax.f32 %v2215_v11, 0.0 }
 0x811   : > { %v2216_v47 = vmax.f32 %v2214_v42, 0.0 }
 0x812   : > { %v2219_v50 = vadd.f32 %v2217_v44, %v4574_v46 }
 0x813   : > { %v2218_v51 = vadd.f32 %v2216_v47, %v4576_v48 }
 0x814   : > { %2221 = vst [vmem:[%s340_s12 + $0x8] sm:$0xff] %v2219_v50 }
 0x815   : > { %2220 = vst [vmem:[%s340_s12] sm:$0xff] %v2218_v51 }
 0x816   : > { %4177 = shalt.err (!%p4174_p4)
}
 0x817   : > { %s4178_s13 = scalar_lea.hbm %s4961_s11, 256  ;;  %s4182_s14 = scalar_lea.hbm %s5013_s7, 512 }
 0x818   : > { %p4179_p9 = scmp.ne.s32.totalorder %s4961_s11, %s4178_s13  ;;  %p4183_p8 = scmp.lt.u32.totalorder %s4961_s11, %s5013_s7 }
 0x819   : > { %p4184_p13 = scmp.lt.u32.totalorder %s4182_s14, %s4178_s13  ;;  %p4186_p10 = scmp.lt.u32.totalorder %s4178_s13, %s4961_s11 }
 0x81a   : > { %p4180_p0 = pnand %p4179_p9, %p4444_p5 }
 0x81b   : > { %p4185_p6 = por %p4184_p13, %p4183_p8 }
 0x81c   : > { %p4181_p11 = pneg %p4180_p0 }
 0x81d   : > { %p4187_p3 = por %p4186_p10, %p4185_p6 }
 0x81f   : > { %p4188_p7 = pnand %p4187_p3, %p4181_p11 }
 0x821   : > { %4191 = shalt.err (!%p4188_p7)
}
 0x822   : > { %s4248_s16 = smov 128   ;;  %s4249_s29 = smov 8  }
 0x823   : > { %3982 = dma.vmem_to_hbm [thread:$0]  (%p4444_p5), %s4955_s20, 256, %s4961_s11, %s2223_s23, %s4248_s16, %s4248_s16, %s4249_s29  }
 0x824 PF: > { %s5033_s28 = sld [smem:[#allocation16_spill]]  ;;  %s2251_s8 = sand.u32 1, %s4226_s24  }
 0x825   : > { %p5035_p1 = scmp.ge.s32.totalorder %s4238_s27, 2  ;;  %s2252_s30 = scalar_lea.sflag [#allocation5], %s2251_s8 }
 0x82a   : > { %p5034_p12 = scmp.ne.s32.totalorder %s5033_s28, 0 }
 0x82c   : > { %p3999_p2 = pnand %p5035_p1, %p5034_p12 }
 0x82e   : > { %4221 = dma.done.wait (!%p3999_p2), %s2252_s30, 256  }
 0x82f   : > { %4223 = vsyncadd (!%p3999_p2), %s2252_s30, 4294967040  ;;  %p22_p4 = scmp.ge.s32.totalorder %s4430_s22, 4   ;;  %s5036_s24 = smov %s4230_s25 }
 0x830   : > { %s5037_s25 = smov %s4234_s26  ;;  %s5038_s26 = smov %s4440_s18 }
 0x831   : > { %s5039_s27 = smov %s4430_s22  ;;  %24 = sbr.rel (!%p22_p4) target bundleno = 7 (0x7), region = 109 }
 0x838   :  { %2257 = vsyncpa [#allocation4], 1 }
 0x839   :  { %2259 = vsyncpa [#allocation4 + $0x1], 1 }
 0x83a   :  { %2260 = vsyncpa [#allocation7], 1 }
 0x83b   :  { %2261 = vsyncpa [#allocation10], 1 }
 0x83c   :  { %2262 = vsyncpa [#allocation5], 1 }
 0x83d   :  { %2264 = vsyncpa [#allocation5 + $0x1], 1 }

</bundles_post_ra>
